<compile_context>
chip_gen: v7x
topology: tpu7x:2x2x1
jax: 0.10.0
libtpu: 0.0.40
codegen_flags: <defaults>
</compile_context>

<pallas_src>
import math

import jax
import jax.numpy as jnp
from jax.experimental import pallas as pl
from jax.experimental.pallas import tpu as pltpu

# ---- small synthetic config (OpenCLIP ViT-H-14 text tower scaled down, lane-dense D) ----
B = 2        # batch
S = 8        # context length (stands in for max_length=77; pad to 128 at real scale)
V = 64       # vocab size
D = 128      # transformer width (multiple of 128 -> lane-dense activations & stores)
H = 4        # attention heads
DH = D // H  # head dim
F = 4 * D    # MLP hidden
L = 2        # number of resblocks
EPS = 1e-5


# ---------------- in-kernel math helpers (traced inside the kernel) ----------------
def _gelu(x):
    # tanh-approx GELU (one EUP transcendental).  ~1e-3 per-activation drift vs torch's
    # exact erf GELU; validate end-to-end cosine similarity at real scale.
    c = math.sqrt(2.0 / math.pi)
    return 0.5 * x * (1.0 + jnp.tanh(c * (x + 0.044715 * x * x * x)))


def _layernorm(x, g, b):
    mu = jnp.mean(x, axis=-1, keepdims=True)
    xc = x - mu
    var = jnp.mean(xc * xc, axis=-1, keepdims=True)
    return xc * jax.lax.rsqrt(var + EPS) * g + b


def _mha_single_batch(qkv_b, keep):
    """Head-batched causal attention for one batch row.

    qkv_b: [S, 3D] f32 (Q columns already pre-scaled by 1/sqrt(DH)); keep: [S, S] bool.
    """
    q = qkv_b[:, 0 * D:1 * D]          # lane-tile-aligned column slices (D % 128 == 0)
    k = qkv_b[:, 1 * D:2 * D]
    v = qkv_b[:, 2 * D:3 * D]
    qh = jnp.transpose(q.reshape(S, H, DH), (1, 0, 2))     # [H, S, DH]
    kh = jnp.transpose(k.reshape(S, H, DH), (1, 0, 2))
    vh = jnp.transpose(v.reshape(S, H, DH), (1, 0, 2))

    # one contraction over all heads (single batch dim -> proven Mosaic lowering path)
    scores = jnp.einsum('hqd,hkd->hqk', qh, kh,
                        preferred_element_type=jnp.float32)            # [H, S, S]
    scores = jnp.where(keep[None], scores, -jnp.inf)                   # causal mask

    m = jnp.max(scores, axis=-1, keepdims=True)
    p = jnp.exp(scores - m)
    # approx reciprocal: ~1e-3 relative row-normalization error; use approx=False if strict
    # parity with the PyTorch reference matters.
    p = p * pl.reciprocal(jnp.sum(p, axis=-1, keepdims=True), approx=True)

    ctx = jnp.einsum('hqk,hkd->hqd', p, vh,
                     preferred_element_type=jnp.float32)               # [H, S, DH]
    return jnp.transpose(ctx, (1, 0, 2)).reshape(S, D)                 # [S, D]


# ---------------- the Pallas kernel: full transformer stack + ln_final ----------------
def _text_transformer_kernel(
    x_ref,
    ln1g_ref, ln1b_ref, wqkv_ref, bqkv_ref, wo_ref, bo_ref,
    ln2g_ref, ln2b_ref, w1_ref, b1_ref, w2_ref, b2_ref,
    lnfg_ref, lnfb_ref,
    out_ref,
):
    layer = pl.program_id(0)
    n_layers = pl.num_programs(0)

    # Layer 0: seed the residual stream.  out_ref's block index is constant over the layer
    # axis, so it stays resident in VMEM and doubles as the carry buffer.
    @pl.when(layer == 0)
    def _():
        out_ref[...] = x_ref[...]

    x = out_ref[...]                                       # [B, S, D] f32 residual stream

    # ---- self-attention sub-block: x = x + out_proj(MHA(ln_1(x))) ----
    h = _layernorm(x, ln1g_ref[0, 0], ln1b_ref[0, 0])      # f32
    h2d = h.reshape(B * S, D).astype(jnp.bfloat16)         # fold batch into matmul M

    # fused QKV projection: one [B*S, D] x [D, 3D] matmul (Q pre-scaled in the weights)
    qkv = jnp.dot(h2d, wqkv_ref[0],
                  preferred_element_type=jnp.float32) + bqkv_ref[0, 0]   # [B*S, 3D] f32

    # causal mask built in-kernel (open_clip: fill(-inf).triu_(1)), hoisted out of the loop
    row = jax.lax.broadcasted_iota(jnp.int32, (S, S), 0)
    col = jax.lax.broadcasted_iota(jnp.int32, (S, S), 1)
    keep = col <= row

    # per-batch-row attention (B is tiny & static); rows are sublane-aligned (S % 8 == 0)
    attn = jnp.concatenate(
        [_mha_single_batch(qkv[b * S:(b + 1) * S], keep) for b in range(B)],
        axis=0)                                            # [B*S, D]

    o = jnp.dot(attn.astype(jnp.bfloat16), wo_ref[0],
                preferred_element_type=jnp.float32) + bo_ref[0, 0]
    x = x + o.reshape(B, S, D)

    # ---- MLP sub-block: x = x + c_proj(gelu(c_fc(ln_2(x)))) ----
    h2 = _layernorm(x, ln2g_ref[0, 0], ln2b_ref[0, 0])
    hf = jnp.dot(h2.reshape(B * S, D).astype(jnp.bfloat16), w1_ref[0],
                 preferred_element_type=jnp.float32) + b1_ref[0, 0]
    hf = _gelu(hf)
    o2 = jnp.dot(hf.astype(jnp.bfloat16), w2_ref[0],
                 preferred_element_type=jnp.float32) + b2_ref[0, 0]
    x = x + o2.reshape(B, S, D)

    @pl.when(layer != n_layers - 1)
    def _():
        out_ref[...] = x                                   # carry residual for next layer

    @pl.when(layer == n_layers - 1)
    def _():
        # final layer: store ln_final(x) directly (no dead carry store)
        out_ref[...] = _layernorm(x, lnfg_ref[0], lnfb_ref[0]).astype(out_ref.dtype)


# ---------------- wrapper (glue: embedding gather + pallas_call) ----------------
def clip_text_encoder(tokens, params):
    # token embedding gather + positional embedding (data-dependent gather -> JAX glue)
    x0 = (params["token_embedding"][tokens]
          + params["positional_embedding"][None]).astype(jnp.float32)

    per_layer3 = lambda l: (l, 0, 0)
    const2 = lambda l: (0, 0)
    const3 = lambda l: (0, 0, 0)

    grid_spec = pltpu.PrefetchScalarGridSpec(
        num_scalar_prefetch=0,
        grid=(L,),                                        # single sequential layer axis
        in_specs=[
            pl.BlockSpec((B, S, D), const3),              # x0: whole batch, fetched once
            pl.BlockSpec((1, 1, D), per_layer3),          # ln_1 gamma
            pl.BlockSpec((1, 1, D), per_layer3),          # ln_1 beta
            pl.BlockSpec((1, D, 3 * D), per_layer3),      # fused QKV weight (bf16, Q pre-scaled)
            pl.BlockSpec((1, 1, 3 * D), per_layer3),      # fused QKV bias (Q pre-scaled)
            pl.BlockSpec((1, D, D), per_layer3),          # attn out_proj weight (bf16)
            pl.BlockSpec((1, 1, D), per_layer3),          # attn out_proj bias
            pl.BlockSpec((1, 1, D), per_layer3),          # ln_2 gamma
            pl.BlockSpec((1, 1, D), per_layer3),          # ln_2 beta
            pl.BlockSpec((1, D, F), per_layer3),          # mlp c_fc weight (bf16)
            pl.BlockSpec((1, 1, F), per_layer3),          # mlp c_fc bias
            pl.BlockSpec((1, F, D), per_layer3),          # mlp c_proj weight (bf16)
            pl.BlockSpec((1, 1, D), per_layer3),          # mlp c_proj bias
            pl.BlockSpec((1, D), const2),                 # ln_final gamma
            pl.BlockSpec((1, D), const2),                 # ln_final beta
        ],
        out_specs=pl.BlockSpec((B, S, D), const3),        # resident carry + final output
    )

    return pl.pallas_call(
        _text_transformer_kernel,
        out_shape=jax.ShapeDtypeStruct((B, S, D), jnp.float32),
        grid_spec=grid_spec,
        compiler_params=pltpu.CompilerParams(
            dimension_semantics=("arbitrary",),
            # toy scale fits easily; raise to ~96-110 MB on v5e/v6e at real ViT-H scale,
            # and F-tile the MLP weights instead on v7x (64 MiB physical VMEM).
            vmem_limit_bytes=32 * 1024 * 1024,
        ),
    )(x0,
      params["ln1_g"], params["ln1_b"], params["w_qkv"], params["b_qkv"],
      params["w_out"], params["b_out"], params["ln2_g"], params["ln2_b"],
      params["w_fc"], params["b_fc"], params["w_proj"], params["b_proj"],
      params["lnf_g"], params["lnf_b"])


def init_params(key):
    ks = jax.random.split(key, 10)
    s = 0.02
    wdt = jnp.bfloat16   # weights streamed in bf16; biases / LN params / activations stay f32
    p = {}
    p["token_embedding"] = jax.random.normal(ks[0], (V, D), jnp.float32) * s
    p["positional_embedding"] = jax.random.normal(ks[1], (S, D), jnp.float32) * 0.01
    p["ln1_g"] = jnp.ones((L, 1, D), jnp.float32)
    p["ln1_b"] = jnp.zeros((L, 1, D), jnp.float32)

    # fused QKV weight/bias with the 1/sqrt(DH) attention scale folded into the Q columns
    # (static one-time transform -> deletes one [B*S, D] VPU multiply per layer in-kernel).
    w_qkv = jax.random.normal(ks[2], (L, D, 3 * D), jnp.float32) * s
    b_qkv = jax.random.normal(ks[3], (L, 1, 3 * D), jnp.float32) * 0.01
    scale = 1.0 / math.sqrt(DH)
    w_qkv = w_qkv.at[:, :, :D].multiply(scale)
    b_qkv = b_qkv.at[:, :, :D].multiply(scale)
    p["w_qkv"] = w_qkv.astype(wdt)
    p["b_qkv"] = b_qkv

    p["w_out"] = (jax.random.normal(ks[4], (L, D, D), jnp.float32) * s).astype(wdt)
    p["b_out"] = jax.random.normal(ks[5], (L, 1, D), jnp.float32) * 0.01
    p["ln2_g"] = jnp.ones((L, 1, D), jnp.float32)
    p["ln2_b"] = jnp.zeros((L, 1, D), jnp.float32)
    p["w_fc"] = (jax.random.normal(ks[6], (L, D, F), jnp.float32) * s).astype(wdt)
    p["b_fc"] = jax.random.normal(ks[7], (L, 1, F), jnp.float32) * 0.01
    p["w_proj"] = (jax.random.normal(ks[8], (L, F, D), jnp.float32) * s).astype(wdt)
    p["b_proj"] = jax.random.normal(ks[9], (L, 1, D), jnp.float32) * 0.01
    p["lnf_g"] = jnp.ones((1, D), jnp.float32)
    p["lnf_b"] = jnp.zeros((1, D), jnp.float32)
    return p


if __name__ == "__main__":
    key = jax.random.PRNGKey(0)
    pkey, tkey = jax.random.split(key)
    params = init_params(pkey)
    # synthetic "tokenized text": integer token ids (tokenizer itself is out of scope)
    tokens = jax.random.randint(tkey, (B, S), 0, V, dtype=jnp.int32)

    z = clip_text_encoder(tokens, params)
    z = jax.block_until_ready(z)

    assert z.shape == (B, S, D), z.shape
    assert bool(jnp.all(jnp.isfinite(z)))
    print("KERNEL_OK")
</pallas_src>

<mosaic_0001>
module attributes {stable_mosaic.version = 11 : i64} {
  func.func @_text_transformer_kernel(%arg0: i32, %arg1: memref<2x8x128xf32, #tpu.memory_space<vmem>>, %arg2: memref<1x1x128xf32, #tpu.memory_space<vmem>>, %arg3: memref<1x1x128xf32, #tpu.memory_space<vmem>>, %arg4: memref<1x128x384xbf16, #tpu.memory_space<vmem>>, %arg5: memref<1x1x384xf32, #tpu.memory_space<vmem>>, %arg6: memref<1x128x128xbf16, #tpu.memory_space<vmem>>, %arg7: memref<1x1x128xf32, #tpu.memory_space<vmem>>, %arg8: memref<1x1x128xf32, #tpu.memory_space<vmem>>, %arg9: memref<1x1x128xf32, #tpu.memory_space<vmem>>, %arg10: memref<1x128x512xbf16, #tpu.memory_space<vmem>>, %arg11: memref<1x1x512xf32, #tpu.memory_space<vmem>>, %arg12: memref<1x512x128xbf16, #tpu.memory_space<vmem>>, %arg13: memref<1x1x128xf32, #tpu.memory_space<vmem>>, %arg14: memref<1x128xf32, #tpu.memory_space<vmem>>, %arg15: memref<1x128xf32, #tpu.memory_space<vmem>>, %arg16: memref<2x8x128xf32, #tpu.memory_space<vmem>>) attributes {dimension_semantics = [#tpu.dimension_semantics<arbitrary>], iteration_bounds = array<i64: 2>, scalar_prefetch = 0 : i64, scratch_operands = 0 : i64, tpu.core_type = #tpu.core_type<tc>, window_params = [{pipeline_mode = #tpu.pipeline_mode<synchronous>, transform_indices = @transform_0, window_bounds = array<i64: 2, 8, 128>}, {transform_indices = @transform_1, window_bounds = array<i64: 1, 1, 128>}, {transform_indices = @transform_2, window_bounds = array<i64: 1, 1, 128>}, {transform_indices = @transform_3, window_bounds = array<i64: 1, 128, 384>}, {transform_indices = @transform_4, window_bounds = array<i64: 1, 1, 384>}, {transform_indices = @transform_5, window_bounds = array<i64: 1, 128, 128>}, {transform_indices = @transform_6, window_bounds = array<i64: 1, 1, 128>}, {transform_indices = @transform_7, window_bounds = array<i64: 1, 1, 128>}, {transform_indices = @transform_8, window_bounds = array<i64: 1, 1, 128>}, {transform_indices = @transform_9, window_bounds = array<i64: 1, 128, 512>}, {transform_indices = @transform_10, window_bounds = array<i64: 1, 1, 512>}, {transform_indices = @transform_11, window_bounds = array<i64: 1, 512, 128>}, {transform_indices = @transform_12, window_bounds = array<i64: 1, 1, 128>}, {pipeline_mode = #tpu.pipeline_mode<synchronous>, transform_indices = @transform_13, window_bounds = array<i64: 1, 128>}, {pipeline_mode = #tpu.pipeline_mode<synchronous>, transform_indices = @transform_14, window_bounds = array<i64: 1, 128>}, {pipeline_mode = #tpu.pipeline_mode<synchronous>, transform_indices = @transform_15, window_bounds = array<i64: 2, 8, 128>}]} {
    %c0_i32 = arith.constant 0 : i32
    %0 = arith.cmpi eq, %arg0, %c0_i32 : i32
    %1 = arith.extui %0 : i1 to i32
    %c0_i32_0 = arith.constant 0 : i32
    %2 = arith.cmpi ne, %1, %c0_i32_0 : i32
    scf.if %2 {
      %c0_69 = arith.constant 0 : index
      %c0_70 = arith.constant 0 : index
      %c0_71 = arith.constant 0 : index
      %179 = vector.load %arg1[%c0_69, %c0_70, %c0_71] : memref<2x8x128xf32, #tpu.memory_space<vmem>>, vector<2x8x128xf32>
      %c0_72 = arith.constant 0 : index
      %c0_73 = arith.constant 0 : index
      %c0_74 = arith.constant 0 : index
      %180 = vector.load %arg16[%c0_72, %c0_73, %c0_74] : memref<2x8x128xf32, #tpu.memory_space<vmem>>, vector<2x8x128xf32>
      tpu.vector_store %arg16[%c0_72, %c0_73, %c0_74], %179 {strides = array<i32>} : memref<2x8x128xf32, #tpu.memory_space<vmem>>, vector<2x8x128xf32>,
    } else {
    }
    %c0 = arith.constant 0 : index
    %c0_1 = arith.constant 0 : index
    %c0_2 = arith.constant 0 : index
    %3 = vector.load %arg16[%c0, %c0_1, %c0_2] : memref<2x8x128xf32, #tpu.memory_space<vmem>>, vector<2x8x128xf32>
    %c0_3 = arith.constant 0 : index
    %c0_4 = arith.constant 0 : index
    %c0_5 = arith.constant 0 : index
    %4 = vector.load %arg2[%c0_3, %c0_4, %c0_5] : memref<1x1x128xf32, #tpu.memory_space<vmem>>, vector<1x1x128xf32>
    %5 = vector.shape_cast %4 : vector<1x1x128xf32> to vector<128xf32>
    %c0_6 = arith.constant 0 : index
    %c0_7 = arith.constant 0 : index
    %c0_8 = arith.constant 0 : index
    %6 = vector.load %arg3[%c0_6, %c0_7, %c0_8] : memref<1x1x128xf32, #tpu.memory_space<vmem>>, vector<1x1x128xf32>
    %7 = vector.shape_cast %6 : vector<1x1x128xf32> to vector<128xf32>
    %cst = arith.constant dense<0.000000e+00> : vector<2x8xf32>
    %8 = vector.multi_reduction <add>, %3, %cst [2] : vector<2x8x128xf32> to vector<2x8xf32>
    %9 = vector.shape_cast %8 : vector<2x8xf32> to vector<2x8x1xf32>
    %cst_9 = arith.constant 1.280000e+02 : f32
    %10 = vector.broadcast %cst_9 : f32 to vector<2x8x1xf32>
    %11 = arith.divf %9, %10 : vector<2x8x1xf32>
    %12 = vector.broadcast %11 : vector<2x8x1xf32> to vector<2x8x128xf32>
    %13 = arith.subf %3, %12 : vector<2x8x128xf32>
    %14 = arith.mulf %13, %13 : vector<2x8x128xf32>
    %cst_10 = arith.constant dense<0.000000e+00> : vector<2x8xf32>
    %15 = vector.multi_reduction <add>, %14, %cst_10 [2] : vector<2x8x128xf32> to vector<2x8xf32>
    %16 = vector.shape_cast %15 : vector<2x8xf32> to vector<2x8x1xf32>
    %cst_11 = arith.constant 1.280000e+02 : f32
    %17 = vector.broadcast %cst_11 : f32 to vector<2x8x1xf32>
    %18 = arith.divf %16, %17 : vector<2x8x1xf32>
    %cst_12 = arith.constant 9.99999974E-6 : f32
    %19 = vector.broadcast %cst_12 : f32 to vector<2x8x1xf32>
    %20 = arith.addf %18, %19 : vector<2x8x1xf32>
    %21 = math.rsqrt %20 : vector<2x8x1xf32>
    %22 = vector.broadcast %21 : vector<2x8x1xf32> to vector<2x8x128xf32>
    %23 = arith.mulf %13, %22 : vector<2x8x128xf32>
    %24 = vector.shape_cast %5 : vector<128xf32> to vector<1x1x128xf32>
    %25 = vector.broadcast %24 : vector<1x1x128xf32> to vector<2x8x128xf32>
    %26 = arith.mulf %23, %25 : vector<2x8x128xf32>
    %27 = vector.shape_cast %7 : vector<128xf32> to vector<1x1x128xf32>
    %28 = vector.broadcast %27 : vector<1x1x128xf32> to vector<2x8x128xf32>
    %29 = arith.addf %26, %28 : vector<2x8x128xf32>
    %30 = vector.shape_cast %29 : vector<2x8x128xf32> to vector<16x128xf32>
    %31 = arith.truncf %30 : vector<16x128xf32> to vector<16x128xbf16>
    %c0_13 = arith.constant 0 : index
    %c0_14 = arith.constant 0 : index
    %c0_15 = arith.constant 0 : index
    %32 = vector.load %arg4[%c0_13, %c0_14, %c0_15] : memref<1x128x384xbf16, #tpu.memory_space<vmem>>, vector<1x128x384xbf16>
    %33 = vector.shape_cast %32 : vector<1x128x384xbf16> to vector<128x384xbf16>
    %cst_16 = arith.constant dense<0.000000e+00> : vector<16x384xf32>
    %34 = tpu.matmul %31, %33, %cst_16 {dimension_numbers = #tpu.dot_dimension_numbers<[1], [0], [0], [1], [0, 0, 1, 1], [], []>} : vector<16x128xbf16>, vector<128x384xbf16>, vector<16x384xf32> -> vector<16x384xf32>
    %c0_17 = arith.constant 0 : index
    %c0_18 = arith.constant 0 : index
    %c0_19 = arith.constant 0 : index
    %35 = vector.load %arg5[%c0_17, %c0_18, %c0_19] : memref<1x1x384xf32, #tpu.memory_space<vmem>>, vector<1x1x384xf32>
    %36 = vector.shape_cast %35 : vector<1x1x384xf32> to vector<384xf32>
    %37 = vector.shape_cast %36 : vector<384xf32> to vector<1x384xf32>
    %38 = vector.broadcast %37 : vector<1x384xf32> to vector<16x384xf32>
    %39 = arith.addf %34, %38 : vector<16x384xf32>
    %40 = tpu.iota {dimensions = array<i32: 0>} : vector<8x8xi32>
    %41 = tpu.iota {dimensions = array<i32: 1>} : vector<8x8xi32>
    %42 = arith.cmpi sle, %41, %40 : vector<8x8xi32>
    %43 = vector.extract_strided_slice %39 {offsets = [0, 0], sizes = [8, 384], strides = [1, 1]} : vector<16x384xf32> to vector<8x384xf32>
    %44 = vector.extract_strided_slice %43 {offsets = [0, 0], sizes = [8, 128], strides = [1, 1]} : vector<8x384xf32> to vector<8x128xf32>
    %45 = vector.extract_strided_slice %43 {offsets = [0, 128], sizes = [8, 128], strides = [1, 1]} : vector<8x384xf32> to vector<8x128xf32>
    %46 = vector.extract_strided_slice %43 {offsets = [0, 256], sizes = [8, 128], strides = [1, 1]} : vector<8x384xf32> to vector<8x128xf32>
    %47 = vector.shape_cast %44 : vector<8x128xf32> to vector<8x4x32xf32>
    %48 = tpu.transpose %47, [1, 0, 2] : vector<8x4x32xf32> -> vector<4x8x32xf32>
    %49 = vector.shape_cast %45 : vector<8x128xf32> to vector<8x4x32xf32>
    %50 = tpu.transpose %49, [1, 0, 2] : vector<8x4x32xf32> -> vector<4x8x32xf32>
    %51 = vector.shape_cast %46 : vector<8x128xf32> to vector<8x4x32xf32>
    %52 = tpu.transpose %51, [1, 0, 2] : vector<8x4x32xf32> -> vector<4x8x32xf32>
    "tpu.trace_start"() <{level = 10 : i32, message = "hqd,hkd->hqk"}> : () -> ()
    %cst_20 = arith.constant dense<0.000000e+00> : vector<4x8x8xf32>
    %53 = tpu.matmul %48, %50, %cst_20 {dimension_numbers = #tpu.dot_dimension_numbers<[2], [2], [1], [1], [0, 0, 0, 1, 1, 1], [0], [0]>} : vector<4x8x32xf32>, vector<4x8x32xf32>, vector<4x8x8xf32> -> vector<4x8x8xf32>
    "tpu.trace_stop"() : () -> ()
    %54 = vector.shape_cast %42 : vector<8x8xi1> to vector<1x8x8xi1>
    %cst_21 = arith.constant 0xFF800000 : f32
    %55 = vector.shape_cast %54 : vector<1x8x8xi1> to vector<1x8x8xi1>
    %56 = vector.broadcast %55 : vector<1x8x8xi1> to vector<4x8x8xi1>
    %57 = vector.broadcast %cst_21 : f32 to vector<4x8x8xf32>
    %58 = arith.select %56, %53, %57 : vector<4x8x8xi1>, vector<4x8x8xf32>
    %cst_22 = arith.constant dense<0xFF800000> : vector<4x8xf32>
    %59 = vector.multi_reduction <maximumf>, %58, %cst_22 [2] : vector<4x8x8xf32> to vector<4x8xf32>
    %60 = vector.shape_cast %59 : vector<4x8xf32> to vector<4x8x1xf32>
    %61 = vector.broadcast %60 : vector<4x8x1xf32> to vector<4x8x8xf32>
    %62 = arith.subf %58, %61 : vector<4x8x8xf32>
    %63 = math.exp %62 : vector<4x8x8xf32>
    %cst_23 = arith.constant dense<0.000000e+00> : vector<4x8xf32>
    %64 = vector.multi_reduction <add>, %63, %cst_23 [2] : vector<4x8x8xf32> to vector<4x8xf32>
    %65 = vector.shape_cast %64 : vector<4x8xf32> to vector<4x8x1xf32>
    %66 = tpu.reciprocal %65 {approx = true} : vector<4x8x1xf32> -> vector<4x8x1xf32>
    %67 = vector.broadcast %66 : vector<4x8x1xf32> to vector<4x8x8xf32>
    %68 = arith.mulf %63, %67 : vector<4x8x8xf32>
    "tpu.trace_start"() <{level = 10 : i32, message = "hqk,hkd->hqd"}> : () -> ()
    %cst_24 = arith.constant dense<0.000000e+00> : vector<4x8x32xf32>
    %69 = tpu.matmul %68, %52, %cst_24 {dimension_numbers = #tpu.dot_dimension_numbers<[2], [1], [1], [2], [0, 0, 0, 1, 1, 2], [0], [0]>} : vector<4x8x8xf32>, vector<4x8x32xf32>, vector<4x8x32xf32> -> vector<4x8x32xf32>
    "tpu.trace_stop"() : () -> ()
    %70 = tpu.transpose %69, [1, 0, 2] : vector<4x8x32xf32> -> vector<8x4x32xf32>
    %71 = vector.shape_cast %70 : vector<8x4x32xf32> to vector<8x128xf32>
    %72 = vector.extract_strided_slice %39 {offsets = [8, 0], sizes = [8, 384], strides = [1, 1]} : vector<16x384xf32> to vector<8x384xf32>
    %73 = vector.extract_strided_slice %72 {offsets = [0, 0], sizes = [8, 128], strides = [1, 1]} : vector<8x384xf32> to vector<8x128xf32>
    %74 = vector.extract_strided_slice %72 {offsets = [0, 128], sizes = [8, 128], strides = [1, 1]} : vector<8x384xf32> to vector<8x128xf32>
    %75 = vector.extract_strided_slice %72 {offsets = [0, 256], sizes = [8, 128], strides = [1, 1]} : vector<8x384xf32> to vector<8x128xf32>
    %76 = vector.shape_cast %73 : vector<8x128xf32> to vector<8x4x32xf32>
    %77 = tpu.transpose %76, [1, 0, 2] : vector<8x4x32xf32> -> vector<4x8x32xf32>
    %78 = vector.shape_cast %74 : vector<8x128xf32> to vector<8x4x32xf32>
    %79 = tpu.transpose %78, [1, 0, 2] : vector<8x4x32xf32> -> vector<4x8x32xf32>
    %80 = vector.shape_cast %75 : vector<8x128xf32> to vector<8x4x32xf32>
    %81 = tpu.transpose %80, [1, 0, 2] : vector<8x4x32xf32> -> vector<4x8x32xf32>
    "tpu.trace_start"() <{level = 10 : i32, message = "hqd,hkd->hqk"}> : () -> ()
    %cst_25 = arith.constant dense<0.000000e+00> : vector<4x8x8xf32>
    %82 = tpu.matmul %77, %79, %cst_25 {dimension_numbers = #tpu.dot_dimension_numbers<[2], [2], [1], [1], [0, 0, 0, 1, 1, 1], [0], [0]>} : vector<4x8x32xf32>, vector<4x8x32xf32>, vector<4x8x8xf32> -> vector<4x8x8xf32>
    "tpu.trace_stop"() : () -> ()
    %83 = vector.shape_cast %42 : vector<8x8xi1> to vector<1x8x8xi1>
    %cst_26 = arith.constant 0xFF800000 : f32
    %84 = vector.shape_cast %83 : vector<1x8x8xi1> to vector<1x8x8xi1>
    %85 = vector.broadcast %84 : vector<1x8x8xi1> to vector<4x8x8xi1>
    %86 = vector.broadcast %cst_26 : f32 to vector<4x8x8xf32>
    %87 = arith.select %85, %82, %86 : vector<4x8x8xi1>, vector<4x8x8xf32>
    %cst_27 = arith.constant dense<0xFF800000> : vector<4x8xf32>
    %88 = vector.multi_reduction <maximumf>, %87, %cst_27 [2] : vector<4x8x8xf32> to vector<4x8xf32>
    %89 = vector.shape_cast %88 : vector<4x8xf32> to vector<4x8x1xf32>
    %90 = vector.broadcast %89 : vector<4x8x1xf32> to vector<4x8x8xf32>
    %91 = arith.subf %87, %90 : vector<4x8x8xf32>
    %92 = math.exp %91 : vector<4x8x8xf32>
    %cst_28 = arith.constant dense<0.000000e+00> : vector<4x8xf32>
    %93 = vector.multi_reduction <add>, %92, %cst_28 [2] : vector<4x8x8xf32> to vector<4x8xf32>
    %94 = vector.shape_cast %93 : vector<4x8xf32> to vector<4x8x1xf32>
    %95 = tpu.reciprocal %94 {approx = true} : vector<4x8x1xf32> -> vector<4x8x1xf32>
    %96 = vector.broadcast %95 : vector<4x8x1xf32> to vector<4x8x8xf32>
    %97 = arith.mulf %92, %96 : vector<4x8x8xf32>
    "tpu.trace_start"() <{level = 10 : i32, message = "hqk,hkd->hqd"}> : () -> ()
    %cst_29 = arith.constant dense<0.000000e+00> : vector<4x8x32xf32>
    %98 = tpu.matmul %97, %81, %cst_29 {dimension_numbers = #tpu.dot_dimension_numbers<[2], [1], [1], [2], [0, 0, 0, 1, 1, 2], [0], [0]>} : vector<4x8x8xf32>, vector<4x8x32xf32>, vector<4x8x32xf32> -> vector<4x8x32xf32>
    "tpu.trace_stop"() : () -> ()
    %99 = tpu.transpose %98, [1, 0, 2] : vector<4x8x32xf32> -> vector<8x4x32xf32>
    %100 = vector.shape_cast %99 : vector<8x4x32xf32> to vector<8x128xf32>
    %101 = tpu.concatenate %71, %100 in 0 : vector<8x128xf32>, vector<8x128xf32> -> vector<16x128xf32>
    %102 = arith.truncf %101 : vector<16x128xf32> to vector<16x128xbf16>
    %c0_30 = arith.constant 0 : index
    %c0_31 = arith.constant 0 : index
    %c0_32 = arith.constant 0 : index
    %103 = vector.load %arg6[%c0_30, %c0_31, %c0_32] : memref<1x128x128xbf16, #tpu.memory_space<vmem>>, vector<1x128x128xbf16>
    %104 = vector.shape_cast %103 : vector<1x128x128xbf16> to vector<128x128xbf16>
    %cst_33 = arith.constant dense<0.000000e+00> : vector<16x128xf32>
    %105 = tpu.matmul %102, %104, %cst_33 {dimension_numbers = #tpu.dot_dimension_numbers<[1], [0], [0], [1], [0, 0, 1, 1], [], []>} : vector<16x128xbf16>, vector<128x128xbf16>, vector<16x128xf32> -> vector<16x128xf32>
    %c0_34 = arith.constant 0 : index
    %c0_35 = arith.constant 0 : index
    %c0_36 = arith.constant 0 : index
    %106 = vector.load %arg7[%c0_34, %c0_35, %c0_36] : memref<1x1x128xf32, #tpu.memory_space<vmem>>, vector<1x1x128xf32>
    %107 = vector.shape_cast %106 : vector<1x1x128xf32> to vector<128xf32>
    %108 = vector.shape_cast %107 : vector<128xf32> to vector<1x128xf32>
    %109 = vector.broadcast %108 : vector<1x128xf32> to vector<16x128xf32>
    %110 = arith.addf %105, %109 : vector<16x128xf32>
    %111 = vector.shape_cast %110 : vector<16x128xf32> to vector<2x8x128xf32>
    %112 = arith.addf %3, %111 : vector<2x8x128xf32>
    %c0_37 = arith.constant 0 : index
    %c0_38 = arith.constant 0 : index
    %c0_39 = arith.constant 0 : index
    %113 = vector.load %arg8[%c0_37, %c0_38, %c0_39] : memref<1x1x128xf32, #tpu.memory_space<vmem>>, vector<1x1x128xf32>
    %114 = vector.shape_cast %113 : vector<1x1x128xf32> to vector<128xf32>
    %c0_40 = arith.constant 0 : index
    %c0_41 = arith.constant 0 : index
    %c0_42 = arith.constant 0 : index
    %115 = vector.load %arg9[%c0_40, %c0_41, %c0_42] : memref<1x1x128xf32, #tpu.memory_space<vmem>>, vector<1x1x128xf32>
    %116 = vector.shape_cast %115 : vector<1x1x128xf32> to vector<128xf32>
    %cst_43 = arith.constant dense<0.000000e+00> : vector<2x8xf32>
    %117 = vector.multi_reduction <add>, %112, %cst_43 [2] : vector<2x8x128xf32> to vector<2x8xf32>
    %118 = vector.shape_cast %117 : vector<2x8xf32> to vector<2x8x1xf32>
    %cst_44 = arith.constant 1.280000e+02 : f32
    %119 = vector.broadcast %cst_44 : f32 to vector<2x8x1xf32>
    %120 = arith.divf %118, %119 : vector<2x8x1xf32>
    %121 = vector.broadcast %120 : vector<2x8x1xf32> to vector<2x8x128xf32>
    %122 = arith.subf %112, %121 : vector<2x8x128xf32>
    %123 = arith.mulf %122, %122 : vector<2x8x128xf32>
    %cst_45 = arith.constant dense<0.000000e+00> : vector<2x8xf32>
    %124 = vector.multi_reduction <add>, %123, %cst_45 [2] : vector<2x8x128xf32> to vector<2x8xf32>
    %125 = vector.shape_cast %124 : vector<2x8xf32> to vector<2x8x1xf32>
    %cst_46 = arith.constant 1.280000e+02 : f32
    %126 = vector.broadcast %cst_46 : f32 to vector<2x8x1xf32>
    %127 = arith.divf %125, %126 : vector<2x8x1xf32>
    %cst_47 = arith.constant 9.99999974E-6 : f32
    %128 = vector.broadcast %cst_47 : f32 to vector<2x8x1xf32>
    %129 = arith.addf %127, %128 : vector<2x8x1xf32>
    %130 = math.rsqrt %129 : vector<2x8x1xf32>
    %131 = vector.broadcast %130 : vector<2x8x1xf32> to vector<2x8x128xf32>
    %132 = arith.mulf %122, %131 : vector<2x8x128xf32>
    %133 = vector.shape_cast %114 : vector<128xf32> to vector<1x1x128xf32>
    %134 = vector.broadcast %133 : vector<1x1x128xf32> to vector<2x8x128xf32>
    %135 = arith.mulf %132, %134 : vector<2x8x128xf32>
    %136 = vector.shape_cast %116 : vector<128xf32> to vector<1x1x128xf32>
    %137 = vector.broadcast %136 : vector<1x1x128xf32> to vector<2x8x128xf32>
    %138 = arith.addf %135, %137 : vector<2x8x128xf32>
    %139 = vector.shape_cast %138 : vector<2x8x128xf32> to vector<16x128xf32>
    %140 = arith.truncf %139 : vector<16x128xf32> to vector<16x128xbf16>
    %c0_48 = arith.constant 0 : index
    %c0_49 = arith.constant 0 : index
    %c0_50 = arith.constant 0 : index
    %141 = vector.load %arg10[%c0_48, %c0_49, %c0_50] : memref<1x128x512xbf16, #tpu.memory_space<vmem>>, vector<1x128x512xbf16>
    %142 = vector.shape_cast %141 : vector<1x128x512xbf16> to vector<128x512xbf16>
    %cst_51 = arith.constant dense<0.000000e+00> : vector<16x512xf32>
    %143 = tpu.matmul %140, %142, %cst_51 {dimension_numbers = #tpu.dot_dimension_numbers<[1], [0], [0], [1], [0, 0, 1, 1], [], []>} : vector<16x128xbf16>, vector<128x512xbf16>, vector<16x512xf32> -> vector<16x512xf32>
    %c0_52 = arith.constant 0 : index
    %c0_53 = arith.constant 0 : index
    %c0_54 = arith.constant 0 : index
    %144 = vector.load %arg11[%c0_52, %c0_53, %c0_54] : memref<1x1x512xf32, #tpu.memory_space<vmem>>, vector<1x1x512xf32>
    %145 = vector.shape_cast %144 : vector<1x1x512xf32> to vector<512xf32>
    %146 = vector.shape_cast %145 : vector<512xf32> to vector<1x512xf32>
    %147 = vector.broadcast %146 : vector<1x512xf32> to vector<16x512xf32>
    %148 = arith.addf %143, %147 : vector<16x512xf32>
    %cst_55 = arith.constant 5.000000e-01 : f32
    %149 = vector.broadcast %cst_55 : f32 to vector<16x512xf32>
    %150 = arith.mulf %149, %148 : vector<16x512xf32>
    %cst_56 = arith.constant 4.471500e-02 : f32
    %151 = vector.broadcast %cst_56 : f32 to vector<16x512xf32>
    %152 = arith.mulf %151, %148 : vector<16x512xf32>
    %153 = arith.mulf %152, %148 : vector<16x512xf32>
    %154 = arith.mulf %153, %148 : vector<16x512xf32>
    %155 = arith.addf %148, %154 : vector<16x512xf32>
    %cst_57 = arith.constant 0.797884583 : f32
    %156 = vector.broadcast %cst_57 : f32 to vector<16x512xf32>
    %157 = arith.mulf %156, %155 : vector<16x512xf32>
    %158 = math.tanh %157 : vector<16x512xf32>
    %cst_58 = arith.constant 1.000000e+00 : f32
    %159 = vector.broadcast %cst_58 : f32 to vector<16x512xf32>
    %160 = arith.addf %159, %158 : vector<16x512xf32>
    %161 = arith.mulf %150, %160 : vector<16x512xf32>
    %162 = arith.truncf %161 : vector<16x512xf32> to vector<16x512xbf16>
    %c0_59 = arith.constant 0 : index
    %c0_60 = arith.constant 0 : index
    %c0_61 = arith.constant 0 : index
    %163 = vector.load %arg12[%c0_59, %c0_60, %c0_61] : memref<1x512x128xbf16, #tpu.memory_space<vmem>>, vector<1x512x128xbf16>
    %164 = vector.shape_cast %163 : vector<1x512x128xbf16> to vector<512x128xbf16>
    %cst_62 = arith.constant dense<0.000000e+00> : vector<16x128xf32>
    %165 = tpu.matmul %162, %164, %cst_62 {dimension_numbers = #tpu.dot_dimension_numbers<[1], [0], [0], [1], [0, 0, 1, 1], [], []>} : vector<16x512xbf16>, vector<512x128xbf16>, vector<16x128xf32> -> vector<16x128xf32>
    %c0_63 = arith.constant 0 : index
    %c0_64 = arith.constant 0 : index
    %c0_65 = arith.constant 0 : index
    %166 = vector.load %arg13[%c0_63, %c0_64, %c0_65] : memref<1x1x128xf32, #tpu.memory_space<vmem>>, vector<1x1x128xf32>
    %167 = vector.shape_cast %166 : vector<1x1x128xf32> to vector<128xf32>
    %168 = vector.shape_cast %167 : vector<128xf32> to vector<1x128xf32>
    %169 = vector.broadcast %168 : vector<1x128xf32> to vector<16x128xf32>
    %170 = arith.addf %165, %169 : vector<16x128xf32>
    %171 = vector.shape_cast %170 : vector<16x128xf32> to vector<2x8x128xf32>
    %172 = arith.addf %112, %171 : vector<2x8x128xf32>
    %c1_i32 = arith.constant 1 : i32
    %173 = arith.cmpi ne, %arg0, %c1_i32 : i32
    %174 = arith.extui %173 : i1 to i32
    %c0_i32_66 = arith.constant 0 : i32
    %175 = arith.cmpi ne, %174, %c0_i32_66 : i32
    scf.if %175 {
      %c0_69 = arith.constant 0 : index
      %c0_70 = arith.constant 0 : index
      %c0_71 = arith.constant 0 : index
      %179 = vector.load %arg16[%c0_69, %c0_70, %c0_71] : memref<2x8x128xf32, #tpu.memory_space<vmem>>, vector<2x8x128xf32>
      tpu.vector_store %arg16[%c0_69, %c0_70, %c0_71], %172 {strides = array<i32>} : memref<2x8x128xf32, #tpu.memory_space<vmem>>, vector<2x8x128xf32>,
    } else {
    }
    %c1_i32_67 = arith.constant 1 : i32
    %176 = arith.cmpi eq, %arg0, %c1_i32_67 : i32
    %177 = arith.extui %176 : i1 to i32
    %c0_i32_68 = arith.constant 0 : i32
    %178 = arith.cmpi ne, %177, %c0_i32_68 : i32
    scf.if %178 {
      %c0_69 = arith.constant 0 : index
      %c0_70 = arith.constant 0 : index
      %179 = vector.load %arg14[%c0_69, %c0_70] : memref<1x128xf32, #tpu.memory_space<vmem>>, vector<1x128xf32>
      %180 = vector.shape_cast %179 : vector<1x128xf32> to vector<128xf32>
      %c0_71 = arith.constant 0 : index
      %c0_72 = arith.constant 0 : index
      %181 = vector.load %arg15[%c0_71, %c0_72] : memref<1x128xf32, #tpu.memory_space<vmem>>, vector<1x128xf32>
      %182 = vector.shape_cast %181 : vector<1x128xf32> to vector<128xf32>
      %cst_73 = arith.constant dense<0.000000e+00> : vector<2x8xf32>
      %183 = vector.multi_reduction <add>, %172, %cst_73 [2] : vector<2x8x128xf32> to vector<2x8xf32>
      %184 = vector.shape_cast %183 : vector<2x8xf32> to vector<2x8x1xf32>
      %cst_74 = arith.constant 1.280000e+02 : f32
      %185 = vector.broadcast %cst_74 : f32 to vector<2x8x1xf32>
      %186 = arith.divf %184, %185 : vector<2x8x1xf32>
      %187 = vector.broadcast %186 : vector<2x8x1xf32> to vector<2x8x128xf32>
      %188 = arith.subf %172, %187 : vector<2x8x128xf32>
      %189 = arith.mulf %188, %188 : vector<2x8x128xf32>
      %cst_75 = arith.constant dense<0.000000e+00> : vector<2x8xf32>
      %190 = vector.multi_reduction <add>, %189, %cst_75 [2] : vector<2x8x128xf32> to vector<2x8xf32>
      %191 = vector.shape_cast %190 : vector<2x8xf32> to vector<2x8x1xf32>
      %cst_76 = arith.constant 1.280000e+02 : f32
      %192 = vector.broadcast %cst_76 : f32 to vector<2x8x1xf32>
      %193 = arith.divf %191, %192 : vector<2x8x1xf32>
      %cst_77 = arith.constant 9.99999974E-6 : f32
      %194 = vector.broadcast %cst_77 : f32 to vector<2x8x1xf32>
      %195 = arith.addf %193, %194 : vector<2x8x1xf32>
      %196 = math.rsqrt %195 : vector<2x8x1xf32>
      %197 = vector.broadcast %196 : vector<2x8x1xf32> to vector<2x8x128xf32>
      %198 = arith.mulf %188, %197 : vector<2x8x128xf32>
      %199 = vector.shape_cast %180 : vector<128xf32> to vector<1x1x128xf32>
      %200 = vector.broadcast %199 : vector<1x1x128xf32> to vector<2x8x128xf32>
      %201 = arith.mulf %198, %200 : vector<2x8x128xf32>
      %202 = vector.shape_cast %182 : vector<128xf32> to vector<1x1x128xf32>
      %203 = vector.broadcast %202 : vector<1x1x128xf32> to vector<2x8x128xf32>
      %204 = arith.addf %201, %203 : vector<2x8x128xf32>
      %c0_78 = arith.constant 0 : index
      %c0_79 = arith.constant 0 : index
      %c0_80 = arith.constant 0 : index
      %205 = vector.load %arg16[%c0_78, %c0_79, %c0_80] : memref<2x8x128xf32, #tpu.memory_space<vmem>>, vector<2x8x128xf32>
      tpu.vector_store %arg16[%c0_78, %c0_79, %c0_80], %204 {strides = array<i32>} : memref<2x8x128xf32, #tpu.memory_space<vmem>>, vector<2x8x128xf32>,
    } else {
    }
    return
  }
  func.func @transform_0(%arg0: i32) -> (i32, i32, i32) {
    %c0_i32 = arith.constant 0 : i32
    %c0_i32_0 = arith.constant 0 : i32
    %c0_i32_1 = arith.constant 0 : i32
    %c0_i32_2 = arith.constant 0 : i32
    return %c0_i32, %c0_i32_0, %c0_i32_1 : i32, i32, i32
  }
  func.func @transform_1(%arg0: i32) -> (i32, i32, i32) {
    %c0_i32 = arith.constant 0 : i32
    %c0_i32_0 = arith.constant 0 : i32
    %c0_i32_1 = arith.constant 0 : i32
    return %arg0, %c0_i32, %c0_i32_0 : i32, i32, i32
  }
  func.func @transform_2(%arg0: i32) -> (i32, i32, i32) {
    %c0_i32 = arith.constant 0 : i32
    %c0_i32_0 = arith.constant 0 : i32
    %c0_i32_1 = arith.constant 0 : i32
    return %arg0, %c0_i32, %c0_i32_0 : i32, i32, i32
  }
  func.func @transform_3(%arg0: i32) -> (i32, i32, i32) {
    %c0_i32 = arith.constant 0 : i32
    %c0_i32_0 = arith.constant 0 : i32
    %c0_i32_1 = arith.constant 0 : i32
    return %arg0, %c0_i32, %c0_i32_0 : i32, i32, i32
  }
  func.func @transform_4(%arg0: i32) -> (i32, i32, i32) {
    %c0_i32 = arith.constant 0 : i32
    %c0_i32_0 = arith.constant 0 : i32
    %c0_i32_1 = arith.constant 0 : i32
    return %arg0, %c0_i32, %c0_i32_0 : i32, i32, i32
  }
  func.func @transform_5(%arg0: i32) -> (i32, i32, i32) {
    %c0_i32 = arith.constant 0 : i32
    %c0_i32_0 = arith.constant 0 : i32
    %c0_i32_1 = arith.constant 0 : i32
    return %arg0, %c0_i32, %c0_i32_0 : i32, i32, i32
  }
  func.func @transform_6(%arg0: i32) -> (i32, i32, i32) {
    %c0_i32 = arith.constant 0 : i32
    %c0_i32_0 = arith.constant 0 : i32
    %c0_i32_1 = arith.constant 0 : i32
    return %arg0, %c0_i32, %c0_i32_0 : i32, i32, i32
  }
  func.func @transform_7(%arg0: i32) -> (i32, i32, i32) {
    %c0_i32 = arith.constant 0 : i32
    %c0_i32_0 = arith.constant 0 : i32
    %c0_i32_1 = arith.constant 0 : i32
    return %arg0, %c0_i32, %c0_i32_0 : i32, i32, i32
  }
  func.func @transform_8(%arg0: i32) -> (i32, i32, i32) {
    %c0_i32 = arith.constant 0 : i32
    %c0_i32_0 = arith.constant 0 : i32
    %c0_i32_1 = arith.constant 0 : i32
    return %arg0, %c0_i32, %c0_i32_0 : i32, i32, i32
  }
  func.func @transform_9(%arg0: i32) -> (i32, i32, i32) {
    %c0_i32 = arith.constant 0 : i32
    %c0_i32_0 = arith.constant 0 : i32
    %c0_i32_1 = arith.constant 0 : i32
    return %arg0, %c0_i32, %c0_i32_0 : i32, i32, i32
  }
  func.func @transform_10(%arg0: i32) -> (i32, i32, i32) {
    %c0_i32 = arith.constant 0 : i32
    %c0_i32_0 = arith.constant 0 : i32
    %c0_i32_1 = arith.constant 0 : i32
    return %arg0, %c0_i32, %c0_i32_0 : i32, i32, i32
  }
  func.func @transform_11(%arg0: i32) -> (i32, i32, i32) {
    %c0_i32 = arith.constant 0 : i32
    %c0_i32_0 = arith.constant 0 : i32
    %c0_i32_1 = arith.constant 0 : i32
    return %arg0, %c0_i32, %c0_i32_0 : i32, i32, i32
  }
  func.func @transform_12(%arg0: i32) -> (i32, i32, i32) {
    %c0_i32 = arith.constant 0 : i32
    %c0_i32_0 = arith.constant 0 : i32
    %c0_i32_1 = arith.constant 0 : i32
    return %arg0, %c0_i32, %c0_i32_0 : i32, i32, i32
  }
  func.func @transform_13(%arg0: i32) -> (i32, i32) {
    %c0_i32 = arith.constant 0 : i32
    %c0_i32_0 = arith.constant 0 : i32
    %c0_i32_1 = arith.constant 0 : i32
    return %c0_i32, %c0_i32_0 : i32, i32
  }
  func.func @transform_14(%arg0: i32) -> (i32, i32) {
    %c0_i32 = arith.constant 0 : i32
    %c0_i32_0 = arith.constant 0 : i32
    %c0_i32_1 = arith.constant 0 : i32
    return %c0_i32, %c0_i32_0 : i32, i32
  }
  func.func @transform_15(%arg0: i32) -> (i32, i32, i32) {
    %c0_i32 = arith.constant 0 : i32
    %c0_i32_0 = arith.constant 0 : i32
    %c0_i32_1 = arith.constant 0 : i32
    %c0_i32_2 = arith.constant 0 : i32
    return %c0_i32, %c0_i32_0, %c0_i32_1 : i32, i32, i32
  }
}

</mosaic_0001>

<bundles_post_ra>
// kernel: tpu_custom_call.1
= control target key start
LH: loop header
LB: loop body
LE: loop exit
PB: predicated region body
PF: predicated region fallthrough
CT: control target
= control target key end

     0   :  { %s6856_s0 = inlined_call_operand.hbm [shape: f32[2,8,128], index: 0, kind: input, shape index: {}]   ;;  %s6857_s1 = inlined_call_operand.hbm [shape: f32[2,1,128], index: 1, kind: input, shape index: {}]   ;;  %s6858_s2 = inlined_call_operand.hbm [shape: f32[2,1,128], index: 2, kind: input, shape index: {}]   ;;  %s6859_s3 = inlined_call_operand.hbm [shape: bf16[2,128,384], index: 3, kind: input, shape index: {}]   ;;  %s6860_s4 = inlined_call_operand.vmem [shape: f32[2,1,384], index: 4, kind: input, shape index: {}]   ;;  %s6861_s5 = inlined_call_operand.hbm [shape: bf16[2,128,128], index: 5, kind: input, shape index: {}]   ;;  %s6862_s6 = inlined_call_operand.vmem [shape: f32[2,1,128], index: 6, kind: input, shape index: {}]   ;;  %s6863_s7 = inlined_call_operand.vmem [shape: f32[2,1,128], index: 7, kind: input, shape index: {}]   ;;  %s6864_s8 = inlined_call_operand.vmem [shape: f32[2,1,128], index: 8, kind: input, shape index: {}]   ;;  %s6865_s9 = inlined_call_operand.hbm [shape: bf16[2,128,512], index: 9, kind: input, shape index: {}]   ;;  %s6866_s10 = inlined_call_operand.vmem [shape: f32[2,1,512], index: 10, kind: input, shape index: {}]   ;;  %s6867_s11 = inlined_call_operand.hbm [shape: bf16[2,512,128], index: 11, kind: input, shape index: {}]   ;;  %s6868_s12 = inlined_call_operand.vmem [shape: f32[2,1,128], index: 12, kind: input, shape index: {}]   ;;  %s6869_s13 = inlined_call_operand.vmem [shape: f32[1,128], index: 13, kind: input, shape index: {}]   ;;  %s6870_s14 = inlined_call_operand.vmem [shape: f32[1,128], index: 14, kind: input, shape index: {}]   ;;  %s6871_s15 = inlined_call_operand.hbm [shape: f32[2,8,128], index: 15, kind: output, shape index: {}]  }
   0x1   :  { %6886 = sst [smem:[#allocation23_spill]] %s6856_s0 }
   0x2   :  { %6887 = sst [smem:[#allocation24_spill]] %s6857_s1 }
   0x3   :  { %6888 = sst [smem:[#allocation25_spill]] %s6858_s2 }
   0x4   :  { %6889 = sst [smem:[#allocation26_spill]] %s6859_s3 }
   0x5   :  { %6890 = sst [smem:[#allocation27_spill]] %s6860_s4 }
   0x6   :  { %6891 = sst [smem:[#allocation28_spill]] %s6861_s5 }
   0x7   :  { %6892 = sst [smem:[#allocation29_spill]] %s6864_s8 }
   0x8   :  { %6893 = sst [smem:[#allocation30_spill]] %s6865_s9 }
   0x9   :  { %6894 = sst [smem:[#allocation31_spill]] %s6866_s10 }
   0xa   :  { %6895 = sst [smem:[#allocation32_spill]] %s6868_s12 }
   0xb   :  { %6896 = sst [smem:[#allocation33_spill]] %s6869_s13 }
   0xc   :  { %6897 = sst [smem:[#allocation34_spill]] %s6870_s14 }
   0xd   :  { %6898 = sst [smem:[#allocation35_spill]] %s6871_s15 }
   0xe   :  { %20 = vsyncpa [#allocation3], 0 }
   0xf   :  { %21 = vsyncpa [#allocation6], 0 }
  0x10   :  { %23 = vsyncpa [#allocation6 + $0x1], 0 }
  0x11   :  { %24 = vsyncpa [#allocation9], 0 }
  0x12   :  { %26 = vsyncpa [#allocation9 + $0x1], 0 }
  0x13   :  { %27 = vsyncpa [#allocation12], 0 }
  0x14   :  { %29 = vsyncpa [#allocation12 + $0x1], 0 }
  0x15   :  { %30 = vsyncpa [#allocation4], 0  ;;  %s5821_s18 = smov 0   ;;  %s5823_s19 = smov 0  }
  0x16   :  { %s5825_s20 = smov 0   ;;  %s5827_s21 = smov 0  }
  0x17 LB: > { %6899 = sst [smem:[#allocation20_spill]] %s5709_s20  ;;  %s5842_s22 = sadd.s32 1, %s5713_s21   ;;  %s5713_s21 = sphi %s5827_s21, %s6939_s21   ;;  %s5709_s20 = sphi %s5825_s20, %s6941_s20   ;;  %s5705_s19 = sphi %s5823_s19, %s6943_s19   ;;  %s5701_s18 = sphi %s5821_s18, %s6942_s18  }
  0x18   : > { %6900 = sst [smem:[#allocation21_spill]] %s5842_s22  ;;  %s64_s23 = sadd.s32 1, %s5709_s20 }
  0x19   : > { %s61_s24 = ssub.s32 %s5713_s21, %s5842_s22  ;;  %p71_p0 = scmp.ne.s32.totalorder %s5709_s20, %s5705_s19 }
  0x1a   : > { %p62_p1 = scmp.eq.s32.totalorder %s61_s24, 0  ;;  %p72_p2 = scmp.eq.s32.totalorder %s5713_s21, 0 }
  0x1b   : > { %p5176_p3 = scmp.lt.s32.totalorder %s5713_s21, 2  ;;  %s5855_s26 = sand.u32 1, %s5713_s21  }
  0x1c   : > { %s5852_s25 = scalar_select %p62_p1, %s5709_s20, %s64_s23  }
  0x1d   : > { %p73_p4 = por %p72_p2, %p71_p0  ;;  %s5858_s27 = sand.u32 1, %s5709_s20  }
  0x1e   : > { %6901 = sst [smem:[#allocation22_spill]] %s5852_s25  ;;  %s4742_s28 = sshll.u32 %s5713_s21, 4 }
  0x1f   : > { %s6902_s1 = sld [smem:[#allocation24_spill]]  ;;  %s472_s17 = scalar_lea.vmem [#allocation5], %s5858_s27 }
  0x20   : > { %s479_s23 = sshll.u32 %s472_s17, 4  ;;  %p5869_p5 = pnand %p5176_p3, %p73_p4  ;;  %s5867_s23 = int_to_ptr.vmem [resolvable:$true] %s479_s23 }
  0x21   : > { %s6904_s2 = sld [smem:[#allocation25_spill]]  ;;  %s6876_s29 = scalar_lea.sflag [#allocation6], %s5855_s26 }
  0x22   : > { %s6903_s24 = scalar_select %p5869_p5, 1, 0 }
  0x23   : > { %p5883_p7 = pneg %p5869_p5 }
  0x25   : > { %s5864_s16 = scalar_lea.hbm %s6902_s1, %s4742_s28  ;;  %s5434_s13 = scalar_lea.hbm %s6902_s1, 32 }
  0x26   : > { %s5429_s30 = scalar_lea.hbm %s5864_s16, 16  ;;  %p5435_p10 = scmp.lt.u32.totalorder %s5864_s16, %s6902_s1 }
  0x27   : > { %s5876_s22 = scalar_lea.hbm %s6904_s2, %s4742_s28  ;;  %p5430_p6 = scmp.ne.s32.totalorder %s5864_s16, %s5429_s30 }
  0x28   : > { %s6905_s15 = scalar_select %p5883_p7, 1, 0 }
  0x29   : > { %p5432_p8 = pnand %p5883_p7, %p5430_p6  ;;  %p5436_p11 = scmp.lt.u32.totalorder %s5434_s13, %s5429_s30 }
  0x2a   : > { %p5438_p13 = scmp.lt.u32.totalorder %s5429_s30, %s5864_s16 }
  0x2b   : > { %p5433_p9 = pneg %p5432_p8  ;;  %p5437_p12 = por %p5436_p11, %p5435_p10 }
  0x2d   : > { %p5439_p0 = por %p5438_p13, %p5437_p12 }
  0x2f   : > { %p5440_p1 = pnand %p5439_p0, %p5433_p9 }
  0x31   : > { %5443 = shalt.err (!%p5440_p1)
}
  0x32   : > { %s5444_s28 = scalar_lea.vmem %s5867_s23, 16  ;;  %s5715_s14 = smov [#allocation5]  }
  0x33   : > { %p5445_p2 = scmp.ne.s32.totalorder %s5867_s23, %s5444_s28  ;;  %s5449_s17 = sshll.u32 %s5715_s14, 4  ;;  %s5450_s17 = int_to_ptr.vmem [resolvable:$false] %s5449_s17 }
  0x34   : > { %s5451_s20 = scalar_lea.vmem %s5450_s17, 32  ;;  %p5452_p6 = scmp.lt.s32.totalorder %s5867_s23, %s5450_s17 }
  0x35   : > { %p5447_p3 = pnand %p5445_p2, %p5883_p7  ;;  %p5453_p8 = scmp.lt.s32.totalorder %s5451_s20, %s5444_s28 }
  0x37   : > { %p5448_p4 = pneg %p5447_p3  ;;  %p5454_p10 = por %p5453_p8, %p5452_p6 }
  0x39   : > { %p5455_p11 = pnand %p5454_p10, %p5448_p4 }
  0x3b   : > { %5458 = shalt.err (!%p5455_p11)
}
  0x3c   : > { %5159 = dma.hbm_to_vmem [thread:$0]  (!%p5869_p5), %s5864_s16, 16, %s5867_s23, %s6876_s29  }
  0x3d   : > { %s5128_s13 = smul.u32 192, %s5858_s27  ;;  %s4748_s25 = sshll.u32 %s5858_s27, 8 }
  0x3e   : > { %s5129_s30 = smul.u32 3072, %s5713_s21  ;;  %s6906_s3 = sld [smem:[#allocation26_spill]] }
  0x3f   : > { %s507_s20 = scalar_lea.vmem [#allocation8], %s5128_s13  ;;  %s6878_s12 = scalar_lea.sflag [#allocation9], %s5855_s26 }
  0x40   : > { %s514_s1 = sshll.u32 %s507_s20, 4  ;;  %s5916_s1 = int_to_ptr.vmem [resolvable:$true] %s514_s1 }
  0x44   : > { %s5914_s17 = scalar_lea.hbm %s6906_s3, %s5129_s30  ;;  %s5464_s14 = scalar_lea.hbm %s6906_s3, 6144 }
  0x45   : > { %s5459_s10 = scalar_lea.hbm %s5914_s17, 3072  ;;  %p5465_p0 = scmp.lt.u32.totalorder %s5914_s17, %s6906_s3 }
  0x46   : > { %p5460_p9 = scmp.ne.s32.totalorder %s5914_s17, %s5459_s10  ;;  %p5466_p1 = scmp.lt.u32.totalorder %s5464_s14, %s5459_s10 }
  0x47   : > { %p5468_p3 = scmp.lt.u32.totalorder %s5459_s10, %s5914_s17 }
  0x48   : > { %p5462_p12 = pnand %p5460_p9, %p5883_p7  ;;  %p5467_p2 = por %p5466_p1, %p5465_p0 }
  0x4a   : > { %p5463_p13 = pneg %p5462_p12  ;;  %p5469_p4 = por %p5468_p3, %p5467_p2 }
  0x4c   : > { %p5470_p6 = pnand %p5469_p4, %p5463_p13 }
  0x4e   : > { %5473 = shalt.err (!%p5470_p6)
}
  0x4f   : > { %s5474_s13 = scalar_lea.vmem %s5916_s1, 3072  ;;  %s5716_s20 = smov [#allocation8]  }
  0x50   : > { %p5475_p8 = scmp.ne.s32.totalorder %s5916_s1, %s5474_s13  ;;  %s5479_s16 = sshll.u32 %s5716_s20, 4  ;;  %s5480_s16 = int_to_ptr.vmem [resolvable:$false] %s5479_s16 }
  0x51   : > { %s5481_s23 = scalar_lea.vmem %s5480_s16, 6144  ;;  %p5482_p9 = scmp.lt.s32.totalorder %s5916_s1, %s5480_s16 }
  0x52   : > { %p5477_p10 = pnand %p5475_p8, %p5883_p7  ;;  %p5483_p12 = scmp.lt.s32.totalorder %s5481_s23, %s5474_s13 }
  0x54   : > { %p5478_p11 = pneg %p5477_p10  ;;  %p5484_p0 = por %p5483_p12, %p5482_p9 }
  0x56   : > { %p5485_p1 = pnand %p5484_p0, %p5478_p11 }
  0x58   : > { %5488 = shalt.err (!%p5485_p1)
}
  0x59   : > { %s5717_s10 = smov 192   ;;  %s5718_s14 = smov 12  }
  0x5a   : > { %5165 = dma.hbm_to_vmem [thread:$0]  (!%p5869_p5), %s5914_s17, 3072, %s5916_s1, %s6878_s12, %s5717_s10, %s5717_s10, %s5718_s14  }
  0x5b   : > { %s4912_s30 = sshll.u32 %s5713_s21, 12  ;;  %s574_s28 = scalar_lea.vmem [#allocation11], %s4748_s25 }
  0x5c   : > { %s581_s13 = sshll.u32 %s574_s28, 4  ;;  %s6907_s9 = sld [smem:[#allocation30_spill]]  ;;  %s5952_s13 = int_to_ptr.vmem [resolvable:$true] %s581_s13 }
  0x5d   : > { %s6877_s29 = scalar_lea.sflag [#allocation12], %s5855_s26 }
  0x62   : > { %s5950_s23 = scalar_lea.hbm %s6907_s9, %s4912_s30  ;;  %s5494_s10 = scalar_lea.hbm %s6907_s9, 8192 }
  0x63   : > { %s5489_s3 = scalar_lea.hbm %s5950_s23, 4096  ;;  %p5495_p4 = scmp.lt.u32.totalorder %s5950_s23, %s6907_s9 }
  0x64   : > { %p5490_p13 = scmp.ne.s32.totalorder %s5950_s23, %s5489_s3  ;;  %p5496_p6 = scmp.lt.u32.totalorder %s5494_s10, %s5489_s3 }
  0x65   : > { %p5498_p10 = scmp.lt.u32.totalorder %s5489_s3, %s5950_s23 }
  0x66   : > { %p5492_p2 = pnand %p5490_p13, %p5883_p7  ;;  %p5497_p8 = por %p5496_p6, %p5495_p4 }
  0x68   : > { %p5493_p3 = pneg %p5492_p2  ;;  %p5499_p11 = por %p5498_p10, %p5497_p8 }
  0x6a   : > { %p5500_p9 = pnand %p5499_p11, %p5493_p3 }
  0x6c   : > { %5503 = shalt.err (!%p5500_p9)
}
  0x6d   : > { %s5504_s20 = scalar_lea.vmem %s5952_s13, 4096  ;;  %s5719_s16 = smov [#allocation11]  }
  0x6e   : > { %p5505_p12 = scmp.ne.s32.totalorder %s5952_s13, %s5504_s20  ;;  %s5509_s1 = sshll.u32 %s5719_s16, 4  ;;  %s5510_s1 = int_to_ptr.vmem [resolvable:$false] %s5509_s1 }
  0x6f   : > { %s5511_s17 = scalar_lea.vmem %s5510_s1, 8192  ;;  %p5512_p13 = scmp.lt.s32.totalorder %s5952_s13, %s5510_s1 }
  0x70   : > { %p5507_p0 = pnand %p5505_p12, %p5883_p7  ;;  %p5513_p2 = scmp.lt.s32.totalorder %s5511_s17, %s5504_s20 }
  0x72   : > { %p5508_p1 = pneg %p5507_p0  ;;  %p5514_p4 = por %p5513_p2, %p5512_p13 }
  0x74   : > { %p5515_p6 = pnand %p5514_p4, %p5508_p1 }
  0x76   : > { %5518 = shalt.err (!%p5515_p6)
}
  0x77   : > { %s5720_s3 = smov 256   ;;  %s5721_s10 = smov 16  }
  0x78   : > { %5171 = dma.hbm_to_vmem [thread:$0]  (!%p5869_p5), %s5950_s23, 4096, %s5952_s13, %s6877_s29, %s5720_s3, %s5720_s3, %s5721_s10  }
  0x79   : > { %s5983_s20 = scalar_lea.hbm %s6867_s11, %s4912_s30  ;;  %s602_s16 = scalar_lea.vmem [#allocation13], %s4748_s25 }
  0x7a   : > { %s609_s1 = sshll.u32 %s602_s16, 4  ;;  %s5990_s17 = sadd.s32 4294967295, %s5713_s21   ;;  %s5987_s1 = int_to_ptr.vmem [resolvable:$true] %s609_s1 }
  0x7b   : > { %p77_p3 = scmp.ne.s32.totalorder %s5705_s19, %s5701_s18  ;;  %p6879_p8 = scmp.eq.s32.totalorder %s5990_s17, 0 }
  0x7c   : > { %p4739_p10 = scmp.ge.s32.totalorder %s5713_s21, 1  ;;  %p437_p11 = scmp.lt.s32.totalorder %s5713_s21, 3 }
  0x7d   : > { %p6000_p12 = por %p6879_p8, %p77_p3  ;;  %s5722_s13 = smov [#allocation2]  }
  0x7e   : > { %p6004_p0 = pnand %p4739_p10, %p437_p11  ;;  %s449_s23 = sshll.u32 %s5722_s13, 4  ;;  %s6008_s23 = int_to_ptr.vmem [resolvable:$true] %s449_s23 }
  0x7f   : > { %s6908_s30 = scalar_select %p6000_p12, 1, 0 }
  0x80   : > { %s6909_s25 = scalar_select %p6004_p0, 1, 0 }
  0x81   : > { %p5152_p1 = pneg %p6004_p0  ;;  %s489_s10 = scalar_lea.vmem [#allocation7], %s5858_s27 }
  0x82   : > { %s496_s14 = sshll.u32 %s489_s10, 4  ;;  %s6911_s0 = sld [smem:[#allocation23_spill]]  ;;  %s6020_s14 = int_to_ptr.vmem [resolvable:$true] %s496_s14 }
  0x83   : > { %p6015_p13 = pnand %p5152_p1, %p6879_p8 }
  0x85   : > { %p5521_p4 = pneg %p6015_p13 }
  0x88   : > { %s5519_s13 = scalar_lea.hbm %s6911_s0, 256 }
  0x89   : > { %p5520_p2 = scmp.ne.s32.totalorder %s6911_s0, %s5519_s13  ;;  %p5526_p10 = scmp.lt.u32.totalorder %s5519_s13, %s6911_s0 }
  0x8b   : > { %p5522_p6 = pnand %p5521_p4, %p5520_p2 }
  0x8d   : > { %p5523_p3 = pneg %p5522_p6 }
  0x8f   : > { %p5528_p11 = pnand %p5526_p10, %p5523_p3 }
  0x91   : > { %5531 = shalt.err (!%p5528_p11)
}
  0x92   : > { %s5532_s10 = scalar_lea.vmem %s6008_s23, 256  ;;  %p5540_p12 = scmp.lt.s32.totalorder %s6008_s23, %s6008_s23 }
  0x93   : > { %p5533_p1 = scmp.ne.s32.totalorder %s6008_s23, %s5532_s10  ;;  %p5541_p0 = scmp.lt.s32.totalorder %s5532_s10, %s5532_s10 }
  0x95   : > { %p5535_p9 = pnand %p5533_p1, %p5521_p4  ;;  %p5542_p5 = por %p5541_p0, %p5540_p12 }
  0x97   : > { %p5536_p8 = pneg %p5535_p9 }
  0x99   : > { %p5543_p7 = pnand %p5542_p5, %p5536_p8 }
  0x9b   : > { %5546 = shalt.err (!%p5543_p7)
}
  0x9c   : > { %s5723_s9 = smov 128   ;;  %s5724_s4 = smov 8  }
  0x9d   : > { %5155 = dma.hbm_to_vmem [thread:$0]  (!%p6015_p13), %s6911_s0, 256, %s6008_s23, [#allocation3], %s5723_s9, %s5723_s9, %s5724_s4  }
  0x9e   : > { %s5547_s18 = scalar_lea.hbm %s5876_s22, 16  ;;  %p6912_p2 = scmp.ne.s32.totalorder %s6905_s15, 0 }
  0x9f   : > { %p5548_p9 = scmp.ne.s32.totalorder %s5876_s22, %s5547_s18  ;;  %s5552_s10 = scalar_lea.hbm %s6904_s2, 32 }
  0xa0   : > { %p5553_p7 = scmp.lt.u32.totalorder %s5876_s22, %s6904_s2  ;;  %p5554_p8 = scmp.lt.u32.totalorder %s5552_s10, %s5547_s18 }
  0xa1   : > { %p5550_p12 = pnand %p5548_p9, %p6912_p2  ;;  %p5556_p4 = scmp.lt.u32.totalorder %s5547_s18, %s5876_s22 }
  0xa2   : > { %p5555_p0 = por %p5554_p8, %p5553_p7 }
  0xa3   : > { %p5551_p5 = pneg %p5550_p12 }
  0xa4   : > { %p5557_p6 = por %p5556_p4, %p5555_p0 }
  0xa6   : > { %p5558_p3 = pnand %p5557_p6, %p5551_p5 }
  0xa8   : > { %5561 = shalt.err (!%p5558_p3)
}
  0xa9   : > { %s5562_s23 = scalar_lea.vmem %s6020_s14, 16  ;;  %s5725_s3 = smov [#allocation7]  }
  0xaa   : > { %p5563_p13 = scmp.ne.s32.totalorder %s6020_s14, %s5562_s23  ;;  %s5567_s9 = sshll.u32 %s5725_s3, 4  ;;  %s5568_s9 = int_to_ptr.vmem [resolvable:$false] %s5567_s9 }
  0xab   : > { %s5569_s8 = scalar_lea.vmem %s5568_s9, 32  ;;  %p5570_p1 = scmp.lt.s32.totalorder %s6020_s14, %s5568_s9 }
  0xac   : > { %p5565_p10 = pnand %p5563_p13, %p6912_p2  ;;  %p5571_p9 = scmp.lt.s32.totalorder %s5569_s8, %s5562_s23 }
  0xae   : > { %p5566_p11 = pneg %p5565_p10  ;;  %p5572_p12 = por %p5571_p9, %p5570_p1 }
  0xb0   : > { %p5573_p7 = pnand %p5572_p12, %p5566_p11 }
  0xb2   : > { %5576 = shalt.err (!%p5573_p7)
}
  0xb3   : > { %p6913_p5 = scmp.ne.s32.totalorder %s6903_s24, 0  ;;  %s6914_s28 = scalar_lea.sflag [#allocation6], %s5855_s26 }
  0xb4   : > { %s6915_s4 = sshll.u32 %s5713_s21, 10  ;;  %s6916_s5 = sld [smem:[#allocation28_spill]] }
  0xb5   : > { %5162 = dma.hbm_to_vmem [thread:$0]  (!%p6913_p5), %s5876_s22, 16, %s6020_s14, %s6914_s28  }
  0xb6   : > { %s6917_s16 = sshll.u32 %s5858_s27, 6 }
  0xb7   : > { %s535_s13 = scalar_lea.vmem [#allocation10], %s6917_s16 }
  0xb8   : > { %s542_s10 = sshll.u32 %s535_s13, 4  ;;  %s6076_s10 = int_to_ptr.vmem [resolvable:$true] %s542_s10 }
  0xba   : > { %s6072_s18 = scalar_lea.hbm %s6916_s5, %s6915_s4  ;;  %s5582_s14 = scalar_lea.hbm %s6916_s5, 2048 }
  0xbb   : > { %s5577_s23 = scalar_lea.hbm %s6072_s18, 1024  ;;  %p5583_p6 = scmp.lt.u32.totalorder %s6072_s18, %s6916_s5 }
  0xbc   : > { %p5578_p8 = scmp.ne.s32.totalorder %s6072_s18, %s5577_s23  ;;  %p5584_p3 = scmp.lt.u32.totalorder %s5582_s14, %s5577_s23 }
  0xbd   : > { %p5586_p10 = scmp.lt.u32.totalorder %s5577_s23, %s6072_s18 }
  0xbe   : > { %p5580_p0 = pnand %p5578_p8, %p6912_p2  ;;  %p5585_p13 = por %p5584_p3, %p5583_p6 }
  0xc0   : > { %p5581_p4 = pneg %p5580_p0  ;;  %p5587_p11 = por %p5586_p10, %p5585_p13 }
  0xc2   : > { %p5588_p1 = pnand %p5587_p11, %p5581_p4 }
  0xc4   : > { %5591 = shalt.err (!%p5588_p1)
}
  0xc5   : > { %s5592_s27 = scalar_lea.vmem %s6076_s10, 1024  ;;  %s5726_s8 = smov [#allocation10]  }
  0xc6   : > { %p5593_p9 = scmp.ne.s32.totalorder %s6076_s10, %s5592_s27  ;;  %s5597_s28 = sshll.u32 %s5726_s8, 4  ;;  %s5598_s28 = int_to_ptr.vmem [resolvable:$false] %s5597_s28 }
  0xc7   : > { %s5599_s4 = scalar_lea.vmem %s5598_s28, 2048  ;;  %p5600_p8 = scmp.lt.s32.totalorder %s6076_s10, %s5598_s28 }
  0xc8   : > { %p5595_p12 = pnand %p5593_p9, %p6912_p2  ;;  %p5601_p0 = scmp.lt.s32.totalorder %s5599_s4, %s5592_s27 }
  0xca   : > { %p5596_p7 = pneg %p5595_p12  ;;  %p5602_p6 = por %p5601_p0, %p5600_p8 }
  0xcc   : > { %p5603_p3 = pnand %p5602_p6, %p5596_p7 }
  0xce   : > { %5606 = shalt.err (!%p5603_p3)
}
  0xcf   : > { %s5727_s12 = smov 64   ;;  %s5728_s29 = smov 4  }
  0xd0   : > { %s6918_s16 = scalar_lea.sflag [#allocation9], %s5855_s26  ;;  %s5607_s13 = scalar_lea.hbm %s5983_s20, 4096 }
  0xd1   : > { %5168 = dma.hbm_to_vmem [thread:$0]  (!%p6913_p5), %s6072_s18, 1024, %s6076_s10, %s6918_s16, %s5727_s12, %s5727_s12, %s5728_s29  }
  0xd2   : > { %p5608_p4 = scmp.ne.s32.totalorder %s5983_s20, %s5607_s13  ;;  %s5612_s22 = scalar_lea.hbm %s6867_s11, 8192 }
  0xd3   : > { %p5613_p11 = scmp.lt.u32.totalorder %s5983_s20, %s6867_s11  ;;  %p5614_p1 = scmp.lt.u32.totalorder %s5612_s22, %s5607_s13 }
  0xd4   : > { %p5610_p13 = pnand %p5608_p4, %p6912_p2  ;;  %p5616_p12 = scmp.lt.u32.totalorder %s5607_s13, %s5983_s20 }
  0xd5   : > { %p5615_p9 = por %p5614_p1, %p5613_p11 }
  0xd6   : > { %p5611_p10 = pneg %p5610_p13 }
  0xd7   : > { %p5617_p7 = por %p5616_p12, %p5615_p9 }
  0xd9   : > { %p5618_p8 = pnand %p5617_p7, %p5611_p10 }
  0xdb   : > { %5621 = shalt.err (!%p5618_p8)
}
  0xdc   : > { %s5622_s18 = scalar_lea.vmem %s5987_s1, 4096  ;;  %s5729_s10 = smov [#allocation13]  }
  0xdd   : > { %p5623_p0 = scmp.ne.s32.totalorder %s5987_s1, %s5622_s18  ;;  %s5627_s9 = sshll.u32 %s5729_s10, 4  ;;  %s5628_s9 = int_to_ptr.vmem [resolvable:$false] %s5627_s9 }
  0xde   : > { %s5629_s27 = scalar_lea.vmem %s5628_s9, 8192  ;;  %p5630_p4 = scmp.lt.s32.totalorder %s5987_s1, %s5628_s9 }
  0xdf   : > { %p5625_p6 = pnand %p5623_p0, %p6912_p2  ;;  %p5631_p13 = scmp.lt.s32.totalorder %s5629_s27, %s5622_s18 }
  0xe1   : > { %p5626_p3 = pneg %p5625_p6  ;;  %p5632_p11 = por %p5631_p13, %p5630_p4 }
  0xe3   : > { %p5633_p1 = pnand %p5632_p11, %p5626_p3 }
  0xe5   : > { %5636 = shalt.err (!%p5633_p1)
}
  0xe6   : > { %s6919_s8 = scalar_lea.sflag [#allocation12], %s5855_s26  ;;  %p6920_p2 = scmp.ne.s32.totalorder %s6909_s25, 0 }
  0xe7   : > { %5174 = dma.hbm_to_vmem [thread:$0]  (!%p6913_p5), %s5983_s20, 4096, %s5987_s1, %s6919_s8, %s5727_s12, %s5727_s12, %s5728_s29  }
  0xe8   : > { %627 = sbr.rel (%p6920_p2) target bundleno = 3757 (0xead), region = 80  ;;  %p6921_p10 = scmp.eq.s32.totalorder (!%p6920_p2), %s5990_s17, 0 }
  0xef   : > { %5680 = dma.done.wait (%p6921_p10), [#allocation3], 256   ;;  %p6922_p9 = pmov %p6921_p10 }
  0xf0   : > { %s633_s15 = sand.u32 1, %s5990_s17   ;;  %s6138_s24 = sand.u32 1, %s5705_s19  }
  0xf1   : > { %5682 = vsyncadd (%p6922_p9), [#allocation3], 4294967040  ;;  %s634_s26 = scalar_lea.sflag [#allocation6], %s633_s15  ;;  %p6923_p12 = scmp.ne.s32.totalorder %s6908_s30, 0 }
  0xf3   : > { %5684 = dma.done.wait (%p6923_p12), %s634_s26, 32  }
  0xf4   : > { %5686 = vsyncadd (%p6923_p12), %s634_s26, 4294967264  ;;  %s5130_s20 = smul.u32 192, %s6138_s24  ;;  %s650_s25 = scalar_lea.sflag [#allocation9], %s633_s15 }
  0xf6   : > { %s6147_s4 = scalar_lea.vmem [#allocation8], %s5130_s20 }
  0xf7   : > { %5688 = dma.done.wait (%p6923_p12), %s650_s25, 4096  }
  0xf8   : > { %5690 = vsyncadd (%p6923_p12), %s650_s25, 4294963200  ;;  %s4756_s12 = sshll.u32 %s6138_s24, 6  ;;  %s4757_s29 = sshll.u32 %s6138_s24, 8 }
  0xf9   : > { %s6155_s16 = scalar_lea.vmem [#allocation10], %s4756_s12  ;;  %s668_s13 = scalar_lea.sflag [#allocation12], %s633_s15 }
  0xfa   : > { %s6157_s23 = scalar_lea.vmem [#allocation11], %s4757_s29 }
  0xfb   : > { %5692 = dma.done.wait (%p6923_p12), %s668_s13, 8192  }
  0xfc   : > { %5694 = vsyncadd (%p6923_p12), %s668_s13, 4294959104  ;;  %p765_p5 = scmp.lt.s32.totalorder %s5990_s17, 1  ;;  %s6924_s15 = sld [smem:[#allocation29_spill]] }
  0xfd   : > { %s6925_s12 = sld [smem:[#allocation27_spill]]  ;;  %s6926_s2 = sld [smem:[#allocation31_spill]] }
  0xfe   : > { %s6165_s21 = scalar_select %p765_p5, %s5990_s17, 1 }
  0xff   : > { %s6927_s18 = sld [smem:[#allocation32_spill]]  ;;  %s6195_s9 = scalar_lea.vmem [#allocation13], %s4757_s29 }
 0x100   : > { %s5131_s22 = smul.u32 3, %s6165_s21  ;;  %s774_s30 = scalar_lea.vmem %s6863_s7, %s6165_s21 }
 0x101   : > { %s4759_s1 = sshll.u32 %s6165_s21, 2  ;;  %p6928_p7 = scmp.ne.s32.totalorder %s5990_s17, 0 }
 0x102   : > { %s777_s26 = scalar_lea.vmem %s6924_s15, %s6165_s21  ;;  %v790_v0 = vld [vmem:[#allocation2] sm:$0xff] (!%p6928_p7)  ;;  %v791_v1 = vld [vmem:[#allocation2 + $0x8] sm:$0xff] (!%p6928_p7) }
 0x103   : > { %s6183_s13 = scalar_lea.vmem %s6925_s12, %s5131_s22  ;;  %s6189_s5 = scalar_lea.vmem %s6926_s2, %s4759_s1  ;;  %792 = vst [vmem:[#allocation14] sm:$0xff] (!%p6928_p7), %v790_v0  ;;  %793 = vst [vmem:[#allocation14 + $0x8] sm:$0xff] (!%p6928_p7), %v791_v1 }
 0x104   : > { %789 = sbr.rel (%p6928_p7) target bundleno = 267 (0x10b), region = 112 }
 0x105   : > { %s784_s10 = scalar_lea.vmem %s6927_s18, %s6165_s21 }
 0x10b PF: > { %v794_v2 = vld [vmem:[#allocation14] sm:$0xff]  ;;  %v795_v3 = vld [vmem:[#allocation14 + $0x8] sm:$0xff]  ;;  %v5730_v6 = vmov 0.0   ;;  %v5257_v20 = vld [vmem:[%s6147_s4 + $0x30] ss:$12 sps:$4 sm:$0xff]   ;;  %v5731_v32 = vmov 0   ;;  %v872_v55 = vlaneseq }
 0x10c   : > { %798 = vadd.xlane.f32.xlu0 %v794_v2  ;;  %v5247_v4 = vld [vmem:[%s6147_s4 + $0x4] ss:$12 sps:$4 sm:$0xff]   ;;  %v5249_v5 = vld [vmem:[%s6147_s4] ss:$12 sps:$4 sm:$0xff]   ;;  %5008 = vmatprep.subr.bf16.mxu1 %v5730_v6  ;;  %v5250_v7 = vld [vmem:[%s6147_s4 + $0x8] ss:$12 sps:$4 sm:$0xff]  }
 0x10d   : > { %v5251_v8 = vld [vmem:[%s6147_s4 + $0x1c] ss:$12 sps:$4 sm:$0xff]   ;;  %1015 = vmatprep.subr.bf16.mxu0 %v5247_v4  ;;  %5009 = vmatpush3.bf16.msra.mxu1 %v5250_v7  ;;  %v5253_v17 = vld [vmem:[%s6147_s4 + $0x18] ss:$12 sps:$4 sm:$0xff]   ;;  %v5254_v18 = vld [vmem:[%s6147_s4 + $0x20] ss:$12 sps:$4 sm:$0xff]  }
 0x10e   : > { %1016 = vmatpush1.bf16.msra.mxu0 %v5249_v5  ;;  %5010 = vmatprep.subr.bf16.mxu1 %v5730_v6  ;;  %v5255_v19 = vld [vmem:[%s6147_s4 + $0x34] ss:$12 sps:$4 sm:$0xff]   ;;  %v5258_v21 = vld [vmem:[%s6147_s4 + $0x38] ss:$12 sps:$4 sm:$0xff]   ;;  %v5262_v24 = vld [vmem:[%s6147_s4 + $0x50] ss:$12 sps:$4 sm:$0xff]  }
 0x10f   : > { %1017 = vmatprep.subr.bf16.mxu0 %v5251_v8  ;;  %v5259_v22 = vld [vmem:[%s6147_s4 + $0x4c] ss:$12 sps:$4 sm:$0xff]   ;;  %v5261_v23 = vld [vmem:[%s6147_s4 + $0x48] ss:$12 sps:$4 sm:$0xff]   ;;  %v5263_v25 = vld [vmem:[%s6147_s4 + $0x64] ss:$12 sps:$4 sm:$0xff]   ;;  %1047 = vmatprep.mubr.bf16.mxu0 %v5731_v32 }
 0x110   : > { %800 = vadd.xlane.f32.xlu0 %v795_v3  ;;  %v5265_v26 = vld [vmem:[%s6147_s4 + $0x60] ss:$12 sps:$4 sm:$0xff]   ;;  %v5266_v27 = vld [vmem:[%s6147_s4 + $0x68] ss:$12 sps:$4 sm:$0xff]   ;;  %v5269_v29 = vld [vmem:[%s6147_s4 + $0x78] ss:$12 sps:$4 sm:$0xff]  }
 0x111   : > { %5011 = vmatpush3.bf16.msra.mxu1 %v5254_v18  ;;  %v5267_v28 = vld [vmem:[%s6147_s4 + $0x7c] ss:$12 sps:$4 sm:$0xff]   ;;  %v5270_v30 = vld [vmem:[%s6147_s4 + $0x80] ss:$12 sps:$4 sm:$0xff]   ;;  %vm5732_vm0 = vmmov 0   ;;  %s6929_s0 = scalar_lea.vmem [#allocation5], %s6138_s24 }
 0x112   : > { %1018 = vmatpush1.bf16.msra.mxu0 %v5253_v17  ;;  %5012 = vmatprep.subr.bf16.mxu1 %v5730_v6  ;;  %v5271_v31 = vld [vmem:[%s6147_s4 + $0x94] ss:$12 sps:$4 sm:$0xff]   ;;  %v5273_v33 = vld [vmem:[%s6147_s4 + $0x90] ss:$12 sps:$4 sm:$0xff]   ;;  %v5274_v34 = vld [vmem:[%s6147_s4 + $0x98] ss:$12 sps:$4 sm:$0xff]  }
 0x113   : > { %1019 = vmatprep.subr.bf16.mxu0 %v5255_v19  ;;  %5024 = vmatprep.mubr.msk.bf16.mxu1 %vm5732_vm0, %v5730_v6  ;;  %v5275_v35 = vld [vmem:[%s6147_s4 + $0xac] ss:$12 sps:$4 sm:$0xff]   ;;  %v5277_v36 = vld [vmem:[%s6147_s4 + $0xa8] ss:$12 sps:$4 sm:$0xff]   ;;  %v5278_v37 = vld [vmem:[%s6147_s4 + $0xb0] ss:$12 sps:$4 sm:$0xff]  }
 0x114   : > { %v4761_v46 = vld [vmem:[%s6929_s0] ss:$0 sm:$0xff]  ;;  %s6930_s2 = scalar_lea.vmem [#allocation7], %s6138_s24  ;;  %v6255_v56 = vshrl.u32 %v872_v55, 7  ;;  %s5733_s24 = smov 96   ;;  %vm1542_vm1 = vcmask 261120  }
 0x115   : > { %5013 = vmatpush3.bf16.msra.mxu1 %v5258_v21  ;;  %v4762_v50 = vld [vmem:[%s6930_s2] ss:$0 sm:$0xff]  ;;  %s5734_s28 = smov 64   ;;  %s5735_s1 = smov 32   ;;  %v5737_v17 = vmov 1934713408  }
 0x116   : > { %1020 = vmatpush1.bf16.msra.mxu0 %v5257_v20  ;;  %5014 = vmatprep.subr.bf16.mxu1 %v5730_v6  ;;  %v874_v57 = vsub.s32 0, %v6255_v56  ;;  %v870_v58 = vld [vmem:[%s6183_s13] sm:$0x7]  ;;  %v878_v59 = vsub.s32 1, %v6255_v56  ;;  %v882_v61 = vsub.s32 2, %v6255_v56  ;;  %v1149_v18 = vunpack.c.l.s4 %v5737_v17  ;;  %p4903_p8 = scmp.eq.s32.totalorder %s5990_s17, 1 }
 0x117   : > { %1021 = vmatprep.subr.bf16.mxu0 %v5259_v22  ;;  %vm1853_vm3 = vcmask 64512   ;;  %vm2339_vm4 = vcmask 523264   ;;  %vm2341_vm5 = vcmask 785408  }
 0x118   : > { %v875_v60 = vrot.slane %v870_v58, %v874_v57  ;;  %v879_v62 = vrot.slane %v870_v58, %v878_v59  ;;  %v1150_v22 = vunpack.c.0.s8 %v1149_v18 }
 0x119   : > { %5015 = vmatpush3.bf16.msra.mxu1 %v5262_v24 }
 0x11a   : > { %1022 = vmatpush1.bf16.msra.mxu0 %v5261_v23  ;;  %5016 = vmatprep.subr.bf16.mxu1 %v5730_v6 }
 0x11b   : > { %1023 = vmatprep.subr.bf16.mxu0 %v5263_v25 }
 0x11d   : > { %5017 = vmatpush3.bf16.msra.mxu1 %v5266_v27 }
 0x11e   : > { %1024 = vmatpush1.bf16.msra.mxu0 %v5265_v26  ;;  %5018 = vmatprep.subr.bf16.mxu1 %v5730_v6 }
 0x11f   : > { %1025 = vmatprep.subr.bf16.mxu0 %v5267_v28 }
 0x121   : > { %5019 = vmatpush3.bf16.msra.mxu1 %v5270_v30  ;;  %v6288_v30 = vsub.s32 %v1150_v22, %v6255_v56 }
 0x122   : > { %1026 = vmatpush1.bf16.msra.mxu0 %v5269_v29  ;;  %5020 = vmatprep.subr.bf16.mxu1 %v5730_v6 }
 0x123   : > { %1027 = vmatprep.subr.bf16.mxu0 %v5271_v31 }
 0x125   : > { %5021 = vmatpush3.bf16.msra.mxu1 %v5274_v34 }
 0x126   : > { %1028 = vmatpush1.bf16.msra.mxu0 %v5273_v33  ;;  %5022 = vmatprep.subr.bf16.mxu1 %v5730_v6 }
 0x127   : > { %1029 = vmatprep.subr.bf16.mxu0 %v5275_v35 }
 0x129   : > { %5023 = vmatpush3.bf16.msra.mxu1 %v5278_v37 }
 0x12a   : > { %1030 = vmatpush1.bf16.msra.mxu0 %v5277_v36  ;;  %5028 = vmatprep.subr.mxu1 %v5730_v6 }
 0x12b   : > { %5068 = vmatprep.subr.mxu0 %v5730_v6 }
 0x199   : > { %v799_v9 = vpop.xlane.xlu0 %798 }
 0x19a   : > { %v803_v10 = vmul.f32 0.0078125, %v799_v9 }
 0x19c   : > { %v6205_v11 = vsub.f32 %v794_v2, %v803_v10  ;;  %v6269_v2 = vrot.slane %v870_v58, %v882_v61 }
 0x19d   : > { %v801_v12 = vpop.xlane.xlu0 %800 }
 0x19e   : > { %v804_v13 = vmul.f32 0.0078125, %v801_v12  ;;  %v807_v14 = vmul.f32 %v6205_v11, %v6205_v11 }
 0x1a0   : > { %v6209_v15 = vsub.f32 %v795_v3, %v804_v13  ;;  %809 = vadd.xlane.f32.xlu1 %v807_v14  ;;  %v5736_v14 = vmov 1983009808  }
 0x1a2   : > { %v808_v16 = vmul.f32 %v6209_v15, %v6209_v15 }
 0x1a4   : > { %811 = vadd.xlane.f32.xlu1 %v808_v16 }
 0x22d   : > { %v810_v38 = vpop.xlane.xlu1 %809 }
 0x22e   : > { %v813_v39 = vmul.f32 0.0078125, %v810_v38 }
 0x230   : > { %v815_v40 = vadd.f32 1e-05, %v813_v39 }
 0x231   : > { %v812_v41 = vpop.xlane.xlu1 %811 }
 0x232   : > { %5367 = vrsqrt.f32 %v815_v40  ;;  %v814_v42 = vmul.f32 0.0078125, %v812_v41 }
 0x234   : > { %v816_v43 = vadd.f32 1e-05, %v814_v42 }
 0x236   : > { %5369 = vrsqrt.f32 %v816_v43 }
 0x23c   : > { %v5368_v44 = vpop.eup %5367 }
 0x23d   : > { %v819_v45 = vmul.f32 %v5368_v44, %v6205_v11 }
 0x23f   : > { %v827_v49 = vmul.f32 %v4761_v46, %v819_v45 }
 0x240   : > { %v5370_v47 = vpop.eup %5369 }
 0x241   : > { %v820_v48 = vmul.f32 %v5370_v47, %v6209_v15  ;;  %v835_v52 = vadd.f32 %v4762_v50, %v827_v49  ;;  %v1117_v15 = vunpack.c.l.s4 %v5736_v14 }
 0x243   : > { %v828_v51 = vmul.f32 %v4761_v46, %v820_v48  ;;  %v1118_v19 = vunpack.c.0.s8 %v1117_v15 }
 0x245   : > { %v836_v53 = vadd.f32 %v4762_v50, %v828_v51  ;;  %v6285_v23 = vsub.s32 %v1118_v19, %v6255_v56 }
 0x247   : > { %v837_v54 = vpack.c.bf16 %v836_v53, %v835_v52 }
 0x249   : > { %1048 = vmatmul.mubr.bf16.vlgmr.msra.gmra.mrb[0].mxu0 %v837_v54  ;;  %5025 = vmatmul.mubr.bf16.vlgmr.msra.gmra.mrb[0].mxu1 %v837_v54 }
 0x24a   : > { %5030 = vmatprep.mubr.msk.f32.mxu1 %vm5732_vm0, %v5730_v6  ;;  %5070 = vmatprep.mubr.msk.f32.mxu0 %vm5732_vm0, %v5730_v6 }
 0x31c   : > { %v1049_v63 = vpop.f32.mrb[0].mxu0  ;;  %v6265_v0 = vpop.f32.mrb[0].mxu1 }
 0x31d   : > { %v1050_v1 = vadd.f32 %v1049_v63, %v875_v60  ;;  %v1051_v3 = vpop.f32.mrb[1].mxu0  ;;  %v5026_v4 = vpop.f32.mrb[1].mxu1 }
 0x31e   : > { %v1052_v5 = vadd.f32 %v1051_v3, %v879_v62  ;;  %v1053_v7 = vpop.f32.mrb[2].mxu0  ;;  %v1095_v8 = vpop.f32.mrb[2].mxu1 }
 0x31f   : > { %v6271_v9 = vadd.f32 %v1053_v7, %v875_v60  ;;  %v6274_v10 = vadd.f32 %v1095_v8, %v6269_v2  ;;  %v1055_v11 = vpop.f32.mrb[3].mxu0  ;;  %v5027_v12 = vpop.f32.mrb[3].mxu1  ;;  %1105 = vrot.lane.b32.xlu1 %v1050_v1, %s5733_s24 }
 0x320   : > { %v6277_v13 = vadd.f32 %v1055_v11, %v879_v62  ;;  %1251 = vrot.lane.b32.xlu0 %v1052_v5, %s5733_s24 }
 0x323   : > { %1254 = vrot.lane.b32.xlu1 %v1052_v5, %s5734_s28 }
 0x324   : > { %1108 = vrot.lane.b32.xlu0 %v1050_v1, %s5734_s28 }
 0x327   : > { %1257 = vrot.lane.b32.xlu1 %v1052_v5, %s5735_s1 }
 0x32b   : > { %1111 = vrot.lane.b32.xlu1 %v1050_v1, %s5735_s1 }
 0x391   : > { %v1106_v16 = vpop.permute.xlu1 %1105 }
 0x392   : > { %v1252_v20 = vpop.permute.xlu0 %1251 }
 0x395   : > { %v1255_v21 = vpop.permute.xlu1 %1254 }
 0x396   : > { %v1260_v24 = vcombine.low %v1052_v5, %v1255_v21  ;;  %v1261_v25 = vcombine.high %v1052_v5, %v1255_v21  ;;  %v1109_v27 = vpop.permute.xlu0 %1108 }
 0x397   : > { %v1114_v36 = vcombine.low %v1050_v1, %v1109_v27  ;;  %v1115_v37 = vcombine.high %v1050_v1, %v1109_v27 }
 0x398   : > { %v1268_v31 = vrot.slane %v1260_v24, %v6285_v23  ;;  %v1275_v33 = vrot.slane %v1261_v25, %v6285_v23 }
 0x399   : > { %v1258_v26 = vpop.permute.xlu1 %1257  ;;  %v1122_v49 = vrot.slane %v1114_v36, %v6285_v23  ;;  %v1129_v50 = vrot.slane %v1115_v37, %v6285_v23 }
 0x39a   : > { %v1276_v28 = vcombine.low %v1252_v20, %v1258_v26  ;;  %v1277_v29 = vcombine.high %v1252_v20, %v1258_v26 }
 0x39c   : > { %v1284_v34 = vrot.slane %v1276_v28, %v6285_v23  ;;  %v1291_v35 = vrot.slane %v1277_v29, %v6285_v23 }
 0x39d   : > { %v1112_v38 = vpop.permute.xlu1 %1111 }
 0x39e   : > { %v1292_v39 = vcombine.low %v1268_v31, %v1284_v34  ;;  %v1293_v40 = vcombine.high %v1268_v31, %v1284_v34  ;;  %v1308_v41 = vcombine.low %v1275_v33, %v1291_v35  ;;  %v1309_v42 = vcombine.high %v1275_v33, %v1291_v35 }
 0x39f   : > { %v1130_v43 = vcombine.low %v1106_v16, %v1112_v38  ;;  %v1131_v44 = vcombine.high %v1106_v16, %v1112_v38 }
 0x3a0   : > { %v1300_v45 = vrot.slane %v1292_v39, %v6288_v30  ;;  %v1307_v46 = vrot.slane %v1293_v40, %v6288_v30  ;;  %v1316_v47 = vrot.slane %v1308_v41, %v6288_v30  ;;  %v1323_v48 = vrot.slane %v1309_v42, %v6288_v30 }
 0x3a1   : > { %v1138_v51 = vrot.slane %v1130_v43, %v6285_v23  ;;  %v1145_v52 = vrot.slane %v1131_v44, %v6285_v23 }
 0x3a2   : > { %v1328_v53 = vcombine.low %v1300_v45, %v1307_v46  ;;  %v4789_v54 = vcombine.high %v1300_v45, %v1307_v46  ;;  %v1344_v58 = vcombine.low %v1316_v47, %v1323_v48  ;;  %v4790_v60 = vcombine.high %v1316_v47, %v1323_v48 }
 0x3a3   : > { %v1146_v62 = vcombine.low %v1122_v49, %v1138_v51  ;;  %v1147_v63 = vcombine.high %v1122_v49, %v1138_v51  ;;  %v1162_v1 = vcombine.low %v1129_v50, %v1145_v52  ;;  %v1163_v3 = vcombine.high %v1129_v50, %v1145_v52 }
 0x3a4   : > { %v1335_v4 = vrot.slane %v1328_v53, %v6285_v23  ;;  %v1343_v5 = vrot.slane %v4789_v54, %v6285_v23  ;;  %v1351_v7 = vrot.slane %v1344_v58, %v6285_v23  ;;  %v1359_v8 = vrot.slane %v4790_v60, %v6285_v23 }
 0x3a5   : > { %v1154_v11 = vrot.slane %v1146_v62, %v6288_v30  ;;  %v1161_v12 = vrot.slane %v1147_v63, %v6288_v30  ;;  %v1170_v14 = vrot.slane %v1162_v1, %v6288_v30  ;;  %v1177_v15 = vrot.slane %v1163_v3, %v6288_v30 }
 0x3a6   : > { %v1360_v16 = vcombine.low %v1335_v4, %v1343_v5  ;;  %v1376_v17 = vcombine.low %v1351_v7, %v1359_v8  ;;  %v1361_v34 = vcombine.high %v1335_v4, %v1343_v5  ;;  %v1377_v35 = vcombine.high %v1351_v7, %v1359_v8 }
 0x3a7   : > { %v1182_v18 = vcombine.low %v1154_v11, %v1161_v12  ;;  %v4787_v19 = vcombine.high %v1154_v11, %v1161_v12  ;;  %v1198_v20 = vcombine.low %v1170_v14, %v1177_v15  ;;  %v4788_v21 = vcombine.high %v1170_v14, %v1177_v15 }
 0x3a8   : > { %v1368_v22 = vrot.slane %v1360_v16, %v6288_v30  ;;  %v1384_v24 = vrot.slane %v1376_v17, %v6288_v30  ;;  %v1375_v42 = vrot.slane %v1361_v34, %v6288_v30  ;;  %v1391_v43 = vrot.slane %v1377_v35, %v6288_v30 }
 0x3a9   : > { %v1189_v25 = vrot.slane %v1182_v18, %v6285_v23  ;;  %v1197_v26 = vrot.slane %v4787_v19, %v6285_v23  ;;  %v1205_v27 = vrot.slane %v1198_v20, %v6285_v23  ;;  %v1213_v28 = vrot.slane %v4788_v21, %v6285_v23 }
 0x3aa   : > { %v1392_v29 = vcombine.low %v1368_v22, %v1384_v24  ;;  %v1393_v41 = vcombine.high %v1368_v22, %v1384_v24  ;;  %v1394_v47 = vcombine.low %v1375_v42, %v1391_v43  ;;  %v1395_v49 = vcombine.high %v1375_v42, %v1391_v43 }
 0x3ab   : > { %v1214_v31 = vcombine.low %v1189_v25, %v1197_v26  ;;  %v1230_v33 = vcombine.low %v1205_v27, %v1213_v28  ;;  %v1215_v38 = vcombine.high %v1189_v25, %v1197_v26  ;;  %v1231_v39 = vcombine.high %v1205_v27, %v1213_v28 }
 0x3ac   : > { %5029 = vmatpush3.xpose.msk.msra.mxu1 %vm1542_vm1, %v1392_v29  ;;  %v1102_v51 = vand.u32 127, %v872_v55  ;;  %v1093_v15 = vadd.f32 %v6265_v0, %v6269_v2 }
 0x3ad   : > { %5033 = vmatprep.subr.mxu1 %v5730_v6  ;;  %v1222_v36 = vrot.slane %v1214_v31, %v6288_v30  ;;  %v1238_v37 = vrot.slane %v1230_v33, %v6288_v30  ;;  %v1229_v45 = vrot.slane %v1215_v38, %v6288_v30  ;;  %v1245_v46 = vrot.slane %v1231_v39, %v6288_v30 }
 0x3ae   : > { %vm6344_vm2 = vcmp.le.s32.totalorder %v1102_v51, %v6255_v56 }
 0x3af   : > { %v1246_v40 = vcombine.low %v1222_v36, %v1238_v37  ;;  %v1247_v44 = vcombine.high %v1222_v36, %v1238_v37  ;;  %v1248_v48 = vcombine.low %v1229_v45, %v1245_v46  ;;  %v1249_v50 = vcombine.high %v1229_v45, %v1245_v46 }
 0x3b1   : > { %5031 = vmatmul.mubr.msk.f32.vlgmr.msra.gmra.mrb[4].mxu1 %vm1542_vm1, %v1246_v40 }
 0x3b2   : > { %5034 = vmatpush3.xpose.msk.msra.mxu1 %vm1542_vm1, %v1393_v41  ;;  %5035 = vmatprep.mubr.msk.f32.mxu1 %vm5732_vm0, %v5730_v6 }
 0x3b3   : > { %5038 = vmatprep.subr.mxu1 %v5730_v6 }
 0x3b5   : > { %5036 = vmatmul.mubr.msk.f32.vlgmr.msra.gmra.mrb[6].mxu1 %vm1542_vm1, %v1247_v44 }
 0x3b6   : > { %5039 = vmatpush3.xpose.msk.msra.mxu1 %vm1542_vm1, %v1394_v47  ;;  %5040 = vmatprep.mubr.msk.f32.mxu1 %vm5732_vm0, %v5730_v6 }
 0x3b7   : > { %5043 = vmatprep.subr.mxu1 %v5730_v6 }
 0x3b9   : > { %5041 = vmatmul.mubr.msk.f32.vlgmr.msra.gmra.mrb[8].mxu1 %vm1542_vm1, %v1248_v48 }
 0x3ba   : > { %5044 = vmatpush3.xpose.msk.msra.mxu1 %vm1542_vm1, %v1395_v49  ;;  %5045 = vmatprep.mubr.msk.f32.mxu1 %vm5732_vm0, %v5730_v6 }
 0x3bb   : > { %5048 = vmatprep.subr.mxu1 %v5730_v6 }
 0x3bd   : > { %5046 = vmatmul.mubr.msk.f32.vlgmr.msra.gmra.mrb[10].mxu1 %vm1542_vm1, %v1249_v50 }
 0x3be   : > { %5050 = vmatprep.mubr.msk.f32.mxu1 %vm5732_vm0, %v5730_v6 }
 0x484   : > { %v1615_v53 = vpop.f32.mrb[4].mxu1 }
 0x485   : > { %v1849_v54 = vsel %vm6344_vm2, %v1615_v53, -inf  ;;  %v5032_v58 = vpop.f32.mrb[5].mxu1 }
 0x486   : > { %v1854_v60 = vsel %vm1853_vm3, %v1849_v54, -inf }
 0x487   : > { %1855 = vmax.xlane.f32.xlu0 %v1854_v60 }
 0x488   : > { %v1691_v62 = vpop.f32.mrb[6].mxu1 }
 0x489   : > { %v1850_v63 = vsel %vm6344_vm2, %v1691_v62, -inf  ;;  %v5037_v1 = vpop.f32.mrb[7].mxu1 }
 0x48a   : > { %v1857_v55 = vsel %vm1853_vm3, %v1850_v63, -inf }
 0x48b   : > { %1858 = vmax.xlane.f32.xlu1 %v1857_v55 }
 0x48c   : > { %v1767_v3 = vpop.f32.mrb[8].mxu1 }
 0x48d   : > { %v1851_v4 = vsel %vm6344_vm2, %v1767_v3, -inf  ;;  %v5042_v5 = vpop.f32.mrb[9].mxu1 }
 0x48e   : > { %v1860_v7 = vsel %vm1853_vm3, %v1851_v4, -inf }
 0x48f   : > { %1861 = vmax.xlane.f32.xlu0 %v1860_v7 }
 0x490   : > { %v1843_v8 = vpop.f32.mrb[10].mxu1 }
 0x491   : > { %v1852_v11 = vsel %vm6344_vm2, %v1843_v8, -inf  ;;  %v5047_v12 = vpop.f32.mrb[11].mxu1 }
 0x492   : > { %v1863_v14 = vsel %vm1853_vm3, %v1852_v11, -inf }
 0x493   : > { %1864 = vmax.xlane.f32.xlu0 %v1863_v14 }
 0x49c   : > { %1400 = vrot.lane.b32.xlu1 %v1093_v15, %s5734_s28 }
 0x4a0   : > { %1403 = vrot.lane.b32.xlu1 %v1093_v15, %s5735_s1 }
 0x4a4   : > { %2493 = vrot.lane.b32.xlu1 %v6277_v13, %s5734_s28 }
 0x4a8   : > { %2496 = vrot.lane.b32.xlu1 %v6277_v13, %s5735_s1 }
 0x4a9   : > { %1397 = vrot.lane.b32.xlu0 %v1093_v15, %s5733_s24 }
 0x4ad   : > { %2490 = vrot.lane.b32.xlu0 %v6277_v13, %s5733_s24 }
 0x4b1   : > { %2344 = vrot.lane.b32.xlu0 %v6271_v9, %s5733_s24 }
 0x514   : > { %v1856_v16 = vpop.xlane.xlu0 %1855 }
 0x515   : > { %v1866_v0 = vsub.f32 %v1849_v54, %v1856_v16 }
 0x517   : > { %v1870_v2 = vmul.f32 1.442695, %v1866_v0 }
 0x518   : > { %v1859_v17 = vpop.xlane.xlu1 %1858 }
 0x519   : > { %5371 = vpow2.f32 %v1870_v2  ;;  %v1867_v18 = vsub.f32 %v1850_v63, %v1859_v17 }
 0x51b   : > { %v1872_v19 = vmul.f32 1.442695, %v1867_v18 }
 0x51c   : > { %v1401_v20 = vpop.permute.xlu1 %1400  ;;  %v1862_v21 = vpop.xlane.xlu0 %1861 }
 0x51d   : > { %5373 = vpow2.f32 %v1872_v19  ;;  %v1868_v22 = vsub.f32 %v1851_v4, %v1862_v21  ;;  %v1406_v29 = vcombine.low %v1093_v15, %v1401_v20  ;;  %v1407_v33 = vcombine.high %v1093_v15, %v1401_v20 }
 0x51f   : > { %v1874_v24 = vmul.f32 1.442695, %v1868_v22  ;;  %v1414_v41 = vrot.slane %v1406_v29, %v6285_v23  ;;  %v1421_v43 = vrot.slane %v1407_v33, %v6285_v23 }
 0x520   : > { %v1404_v25 = vpop.permute.xlu1 %1403  ;;  %v1865_v26 = vpop.xlane.xlu0 %1864 }
 0x521   : > { %5375 = vpow2.f32 %v1874_v24  ;;  %v1869_v27 = vsub.f32 %v1852_v11, %v1865_v26 }
 0x523   : > { %v6373_v28 = vpop.eup %5371  ;;  %v1876_v31 = vmul.f32 1.442695, %v1869_v27 }
 0x524   : > { %v2494_v34 = vpop.permute.xlu1 %2493  ;;  %v1398_v35 = vpop.permute.xlu0 %1397  ;;  %v1878_v36 = vsel %vm1853_vm3, %v6373_v28, 0.0 }
 0x525   : > { %5377 = vpow2.f32 %v1876_v31  ;;  %v1422_v37 = vcombine.low %v1398_v35, %v1404_v25  ;;  %1879 = vadd.xlane.f32.xlu0 %v1878_v36  ;;  %v2499_v38 = vcombine.low %v6277_v13, %v2494_v34  ;;  %v1423_v39 = vcombine.high %v1398_v35, %v1404_v25 }
 0x526   : > { %v2500_v44 = vcombine.high %v6277_v13, %v2494_v34 }
 0x527   : > { %v6378_v40 = vpop.eup %5373  ;;  %v1430_v42 = vrot.slane %v1422_v37, %v6285_v23  ;;  %v1437_v45 = vrot.slane %v1423_v39, %v6285_v23  ;;  %v2507_v54 = vrot.slane %v2499_v38, %v6285_v23 }
 0x528   : > { %v2497_v46 = vpop.permute.xlu1 %2496  ;;  %v2491_v47 = vpop.permute.xlu0 %2490  ;;  %v1881_v48 = vsel %vm1853_vm3, %v6378_v40, 0.0  ;;  %v2514_v3 = vrot.slane %v2500_v44, %v6285_v23 }
 0x529   : > { %v1438_v49 = vcombine.low %v1414_v41, %v1430_v42  ;;  %v1439_v50 = vcombine.high %v1414_v41, %v1430_v42  ;;  %v2515_v51 = vcombine.low %v2491_v47, %v2497_v46  ;;  %v2516_v53 = vcombine.high %v2491_v47, %v2497_v46  ;;  %1882 = vadd.xlane.f32.xlu1 %v1881_v48 }
 0x52a   : > { %v1454_v58 = vcombine.low %v1421_v43, %v1437_v45  ;;  %v1455_v60 = vcombine.high %v1421_v43, %v1437_v45 }
 0x52b   : > { %v6388_v62 = vpop.eup %5375  ;;  %v1446_v13 = vrot.slane %v1438_v49, %v6288_v30  ;;  %v1453_v63 = vrot.slane %v1439_v50, %v6288_v30  ;;  %v2523_v1 = vrot.slane %v2515_v51, %v6285_v23  ;;  %v2530_v55 = vrot.slane %v2516_v53, %v6285_v23 }
 0x52c   : > { %v1462_v4 = vrot.slane %v1454_v58, %v6288_v30  ;;  %v1469_v5 = vrot.slane %v1455_v60, %v6288_v30  ;;  %v1884_v7 = vsel %vm1853_vm3, %v6388_v62, 0.0 }
 0x52d   : > { %v1474_v8 = vcombine.low %v1446_v13, %v1453_v63  ;;  %v4791_v11 = vcombine.high %v1446_v13, %v1453_v63  ;;  %v2531_v12 = vcombine.low %v2507_v54, %v2523_v1  ;;  %v2532_v14 = vcombine.high %v2507_v54, %v2523_v1  ;;  %1885 = vadd.xlane.f32.xlu1 %v1884_v7 }
 0x52e   : > { %v1490_v15 = vcombine.low %v1462_v4, %v1469_v5  ;;  %v4792_v16 = vcombine.high %v1462_v4, %v1469_v5  ;;  %v2547_v0 = vcombine.low %v2514_v3, %v2530_v55  ;;  %v2548_v2 = vcombine.high %v2514_v3, %v2530_v55 }
 0x52f   : > { %v6399_v17 = vpop.eup %5377  ;;  %v1481_v18 = vrot.slane %v1474_v8, %v6285_v23  ;;  %v1489_v19 = vrot.slane %v4791_v11, %v6285_v23  ;;  %v2539_v20 = vrot.slane %v2531_v12, %v6288_v30  ;;  %v2546_v21 = vrot.slane %v2532_v14, %v6288_v30  ;;  %v2345_v8 = vpop.permute.xlu0 %2344 }
 0x530   : > { %v1497_v22 = vrot.slane %v1490_v15, %v6285_v23  ;;  %v1505_v24 = vrot.slane %v4792_v16, %v6285_v23  ;;  %v2555_v25 = vrot.slane %v2547_v0, %v6288_v30  ;;  %v2562_v26 = vrot.slane %v2548_v2, %v6288_v30 }
 0x531   : > { %v2567_v27 = vcombine.low %v2539_v20, %v2546_v21  ;;  %v4809_v29 = vcombine.high %v2539_v20, %v2546_v21  ;;  %v1887_v31 = vsel %vm1853_vm3, %v6399_v17, 0.0  ;;  %v1506_v33 = vcombine.low %v1481_v18, %v1489_v19 }
 0x532   : > { %v2583_v34 = vcombine.low %v2555_v25, %v2562_v26  ;;  %v4810_v35 = vcombine.high %v2555_v25, %v2562_v26  ;;  %1888 = vadd.xlane.f32.xlu0 %v1887_v31  ;;  %v1522_v36 = vcombine.low %v1497_v22, %v1505_v24  ;;  %v1507_v37 = vcombine.high %v1481_v18, %v1489_v19 }
 0x533   : > { %v2574_v38 = vrot.slane %v2567_v27, %v6285_v23  ;;  %v2582_v39 = vrot.slane %v4809_v29, %v6285_v23  ;;  %v1514_v41 = vrot.slane %v1506_v33, %v6288_v30  ;;  %v1523_v42 = vcombine.high %v1497_v22, %v1505_v24 }
 0x534   : > { %v2590_v43 = vrot.slane %v2583_v34, %v6285_v23  ;;  %v2598_v44 = vrot.slane %v4810_v35, %v6285_v23  ;;  %v1530_v45 = vrot.slane %v1522_v36, %v6288_v30  ;;  %v1521_v46 = vrot.slane %v1507_v37, %v6288_v30 }
 0x535   : > { %v2599_v47 = vcombine.low %v2574_v38, %v2582_v39  ;;  %v2600_v48 = vcombine.high %v2574_v38, %v2582_v39  ;;  %v1537_v49 = vrot.slane %v1523_v42, %v6288_v30 }
 0x536   : > { %v2615_v50 = vcombine.low %v2590_v43, %v2598_v44  ;;  %v2616_v51 = vcombine.high %v2590_v43, %v2598_v44  ;;  %v1538_v53 = vcombine.low %v1514_v41, %v1530_v45  ;;  %v1539_v54 = vcombine.high %v1514_v41, %v1530_v45 }
 0x537   : > { %v6420_v58 = vrot.slane %v2599_v47, %v6288_v30  ;;  %v1540_v60 = vcombine.low %v1521_v46, %v1537_v49  ;;  %v1541_v13 = vcombine.high %v1521_v46, %v1537_v49  ;;  %v6423_v63 = vrot.slane %v2600_v48, %v6288_v30 }
 0x538   : > { %5049 = vmatpush3.msra.mxu1 %v1538_v53  ;;  %v6426_v1 = vrot.slane %v2615_v50, %v6288_v30  ;;  %v6429_v55 = vrot.slane %v2616_v51, %v6288_v30 }
 0x539   : > { %5053 = vmatprep.subr.mxu1 %v5730_v6 }
 0x53a   : > { %v2631_v3 = vcombine.low %v6420_v58, %v6426_v1  ;;  %v2632_v4 = vcombine.high %v6420_v58, %v6426_v1  ;;  %v2633_v5 = vcombine.low %v6423_v63, %v6429_v55  ;;  %v2634_v7 = vcombine.high %v6423_v63, %v6429_v55 }
 0x53c   : > { %5069 = vmatpush3.xpose.msk.msra.mxu0 %vm1542_vm1, %v2631_v3 }
 0x53d   : > { %5078 = vmatprep.subr.mxu0 %v5730_v6 }
 0x53e   : > { %2347 = vrot.lane.b32.xlu1 %v6271_v9, %s5734_s28 }
 0x548   : > { %2350 = vrot.lane.b32.xlu0 %v6271_v9, %s5735_s1 }
 0x5b2   : > { %v1880_v11 = vpop.xlane.xlu0 %1879 }
 0x5b3   : > { %5379 = vrcp.f32 %v1880_v11 }
 0x5b6   : > { %v1883_v12 = vpop.xlane.xlu1 %1882 }
 0x5b7   : > { %5381 = vrcp.f32 %v1883_v12 }
 0x5ba   : > { %v1886_v14 = vpop.xlane.xlu1 %1885 }
 0x5bb   : > { %5383 = vrcp.f32 %v1886_v14 }
 0x5bd   : > { %v5380_v15 = vpop.eup %5379 }
 0x5be   : > { %v1894_v16 = vmul.f32 %v5380_v15, %v6373_v28  ;;  %v2348_v0 = vpop.permute.xlu1 %2347 }
 0x5bf   : > { %v1889_v2 = vpop.xlane.xlu0 %1888  ;;  %v2353_v19 = vcombine.low %v6271_v9, %v2348_v0  ;;  %v2354_v21 = vcombine.high %v6271_v9, %v2348_v0 }
 0x5c0   : > { %5385 = vrcp.f32 %v1889_v2  ;;  %5051 = vmatmul.mubr.msk.f32.vlgmr.msra.gmra.mrb[12].mxu1 %vm1853_vm3, %v1894_v16 }
 0x5c1   : > { %v5382_v18 = vpop.eup %5381  ;;  %5054 = vmatpush3.msra.mxu1 %v1539_v54  ;;  %5055 = vmatprep.mubr.msk.f32.mxu1 %vm5732_vm0, %v5730_v6  ;;  %v2361_v26 = vrot.slane %v2353_v19, %v6285_v23 }
 0x5c2   : > { %v1895_v20 = vmul.f32 %v5382_v18, %v6378_v40  ;;  %5058 = vmatprep.subr.mxu1 %v5730_v6  ;;  %v2368_v40 = vrot.slane %v2354_v21, %v6285_v23 }
 0x5c3   : > { %v2351_v22 = vpop.permute.xlu0 %2350 }
 0x5c4   : > { %v2369_v28 = vcombine.low %v2345_v8, %v2351_v22  ;;  %v2370_v24 = vcombine.high %v2345_v8, %v2351_v22  ;;  %5056 = vmatmul.mubr.msk.f32.vlgmr.msra.gmra.mrb[14].mxu1 %vm1853_vm3, %v1895_v20 }
 0x5c5   : > { %v5384_v25 = vpop.eup %5383  ;;  %5059 = vmatpush3.msra.mxu1 %v1540_v60  ;;  %5060 = vmatprep.mubr.msk.f32.mxu1 %vm5732_vm0, %v5730_v6 }
 0x5c6   : > { %v1896_v27 = vmul.f32 %v5384_v25, %v6388_v62  ;;  %v2377_v9 = vrot.slane %v2369_v28, %v6285_v23  ;;  %v2384_v29 = vrot.slane %v2370_v24, %v6285_v23  ;;  %5063 = vmatprep.subr.mxu1 %v5730_v6 }
 0x5c8   : > { %v2385_v31 = vcombine.low %v2361_v26, %v2377_v9  ;;  %v2386_v33 = vcombine.high %v2361_v26, %v2377_v9  ;;  %v2401_v34 = vcombine.low %v2368_v40, %v2384_v29  ;;  %v2402_v35 = vcombine.high %v2368_v40, %v2384_v29  ;;  %5061 = vmatmul.mubr.msk.f32.vlgmr.msra.gmra.mrb[16].mxu1 %vm1853_vm3, %v1896_v27 }
 0x5c9   : > { %5064 = vmatpush3.msra.mxu1 %v1541_v13  ;;  %5065 = vmatprep.mubr.msk.f32.mxu1 %vm5732_vm0, %v5730_v6 }
 0x5ca   : > { %v5386_v36 = vpop.eup %5385  ;;  %v2393_v62 = vrot.slane %v2385_v31, %v6288_v30  ;;  %v2400_v37 = vrot.slane %v2386_v33, %v6288_v30  ;;  %v2409_v38 = vrot.slane %v2401_v34, %v6288_v30  ;;  %v2416_v39 = vrot.slane %v2402_v35, %v6288_v30  ;;  %5073 = vmatprep.subr.mxu1 %v5730_v6 }
 0x5cb   : > { %v1897_v41 = vmul.f32 %v5386_v36, %v6399_v17 }
 0x5cc   : > { %v2421_v42 = vcombine.low %v2393_v62, %v2400_v37  ;;  %v4807_v43 = vcombine.high %v2393_v62, %v2400_v37  ;;  %v2437_v44 = vcombine.low %v2409_v38, %v2416_v39  ;;  %v4808_v45 = vcombine.high %v2409_v38, %v2416_v39 }
 0x5cd   : > { %5066 = vmatmul.mubr.msk.f32.vlgmr.msra.gmra.mrb[18].mxu1 %vm1853_vm3, %v1897_v41 }
 0x5ce   : > { %v2428_v46 = vrot.slane %v2421_v42, %v6285_v23  ;;  %v2436_v47 = vrot.slane %v4807_v43, %v6285_v23  ;;  %v2444_v48 = vrot.slane %v2437_v44, %v6285_v23  ;;  %v2452_v49 = vrot.slane %v4808_v45, %v6285_v23  ;;  %5075 = vmatprep.mubr.msk.f32.mxu1 %vm5732_vm0, %v5730_v6 }
 0x5d0   : > { %v2453_v50 = vcombine.low %v2428_v46, %v2436_v47  ;;  %v2454_v51 = vcombine.high %v2428_v46, %v2436_v47  ;;  %v2469_v17 = vcombine.low %v2444_v48, %v2452_v49  ;;  %v2470_v53 = vcombine.high %v2444_v48, %v2452_v49  ;;  %5074 = vmatpush3.xpose.msk.msra.mxu1 %vm1542_vm1, %v2632_v4 }
 0x5d1   : > { %5083 = vmatprep.subr.mxu1 %v5730_v6 }
 0x5d2   : > { %v2461_v54 = vrot.slane %v2453_v50, %v6288_v30  ;;  %v2477_v60 = vrot.slane %v2469_v17, %v6288_v30  ;;  %v2468_v8 = vrot.slane %v2454_v51, %v6288_v30  ;;  %v2484_v11 = vrot.slane %v2470_v53, %v6288_v30 }
 0x5d4   : > { %v2485_v13 = vcombine.low %v2461_v54, %v2477_v60  ;;  %v2486_v3 = vcombine.high %v2461_v54, %v2477_v60  ;;  %v2487_v58 = vcombine.low %v2468_v8, %v2484_v11  ;;  %v2488_v1 = vcombine.high %v2468_v8, %v2484_v11 }
 0x5d6   : > { %5071 = vmatmul.mubr.msk.f32.vlgmr.msra.gmra.mrb[4].mxu0 %vm1542_vm1, %v2485_v13  ;;  %5076 = vmatmul.mubr.msk.f32.vlgmr.msra.gmra.mrb[20].mxu1 %vm1542_vm1, %v2486_v3 }
 0x5d7   : > { %5079 = vmatpush3.xpose.msk.msra.mxu0 %vm1542_vm1, %v2633_v5  ;;  %5084 = vmatpush3.xpose.msk.msra.mxu1 %vm1542_vm1, %v2634_v7 }
 0x5d8   : > { %5080 = vmatprep.mubr.msk.f32.mxu0 %vm5732_vm0, %v5730_v6  ;;  %5085 = vmatprep.mubr.msk.f32.mxu1 %vm5732_vm0, %v5730_v6 }
 0x5d9   : > { %5088 = vmatprep.subr.mxu0 %v5730_v6  ;;  %5093 = vmatprep.subr.mxu1 %v5730_v6 }
 0x5da   : > { %5081 = vmatmul.mubr.msk.f32.vlgmr.msra.gmra.mrb[6].mxu0 %vm1542_vm1, %v2487_v58  ;;  %5086 = vmatmul.mubr.msk.f32.vlgmr.msra.gmra.mrb[22].mxu1 %vm1542_vm1, %v2488_v1 }
 0x5db   : > { %5090 = vmatprep.mubr.msk.f32.mxu0 %vm5732_vm0, %v5730_v6  ;;  %5095 = vmatprep.mubr.msk.f32.mxu1 %vm5732_vm0, %v5730_v6 }
 0x693   : > { %v1967_v63 = vpop.f32.mrb[12].mxu1 }
 0x694   : > { %v5052_v55 = vpop.f32.mrb[13].mxu1 }
 0x697   : > { %v2040_v4 = vpop.f32.mrb[14].mxu1 }
 0x698   : > { %v5057_v5 = vpop.f32.mrb[15].mxu1 }
 0x69b   : > { %v2113_v7 = vpop.f32.mrb[16].mxu1 }
 0x69c   : > { %v2190_v12 = vcombine.low %v1967_v63, %v2113_v7  ;;  %v2191_v14 = vcombine.high %v1967_v63, %v2113_v7  ;;  %v5062_v15 = vpop.f32.mrb[17].mxu1 }
 0x69e   : > { %v2198_v19 = vrot.slane %v2190_v12, %v6285_v23  ;;  %v2205_v20 = vrot.slane %v2191_v14, %v6285_v23 }
 0x6a0   : > { %v2186_v16 = vpop.f32.mrb[18].mxu1 }
 0x6a1   : > { %v2206_v0 = vcombine.low %v2040_v4, %v2186_v16  ;;  %v2207_v2 = vcombine.high %v2040_v4, %v2186_v16  ;;  %v5067_v18 = vpop.f32.mrb[19].mxu1 }
 0x6a3   : > { %v2214_v21 = vrot.slane %v2206_v0, %v6285_v23  ;;  %v2221_v22 = vrot.slane %v2207_v2, %v6285_v23 }
 0x6a5   : > { %v2222_v28 = vcombine.low %v2198_v19, %v2214_v21  ;;  %v2223_v24 = vcombine.high %v2198_v19, %v2214_v21  ;;  %v2238_v25 = vcombine.low %v2205_v20, %v2221_v22  ;;  %v2239_v26 = vcombine.high %v2205_v20, %v2221_v22 }
 0x6a7   : > { %v2230_v27 = vrot.slane %v2222_v28, %v6288_v30  ;;  %v2237_v40 = vrot.slane %v2223_v24, %v6288_v30  ;;  %v2246_v9 = vrot.slane %v2238_v25, %v6288_v30  ;;  %v2253_v29 = vrot.slane %v2239_v26, %v6288_v30 }
 0x6a9   : > { %v2258_v31 = vcombine.low %v2230_v27, %v2237_v40  ;;  %v4805_v33 = vcombine.high %v2230_v27, %v2237_v40  ;;  %v2274_v34 = vcombine.low %v2246_v9, %v2253_v29  ;;  %v4806_v35 = vcombine.high %v2246_v9, %v2253_v29  ;;  %v2853_v36 = vpop.f32.mrb[4].mxu0  ;;  %v2929_v62 = vpop.f32.mrb[20].mxu1 }
 0x6aa   : > { %v3085_v37 = vsel %vm6344_vm2, %v2853_v36, -inf  ;;  %v5072_v38 = vpop.f32.mrb[5].mxu0  ;;  %v5077_v39 = vpop.f32.mrb[21].mxu1  ;;  %v3086_v8 = vsel %vm6344_vm2, %v2929_v62, -inf }
 0x6ab   : > { %v2265_v41 = vrot.slane %v2258_v31, %v6285_v23  ;;  %v2273_v42 = vrot.slane %v4805_v33, %v6285_v23  ;;  %v2281_v43 = vrot.slane %v2274_v34, %v6285_v23  ;;  %v2289_v44 = vrot.slane %v4806_v35, %v6285_v23 }
 0x6ac   : > { %v3089_v45 = vsel %vm1853_vm3, %v3085_v37, -inf  ;;  %v3092_v5 = vsel %vm1853_vm3, %v3086_v8, -inf }
 0x6ad   : > { %3090 = vmax.xlane.f32.xlu1 %v3089_v45  ;;  %v3005_v46 = vpop.f32.mrb[6].mxu0  ;;  %v3081_v47 = vpop.f32.mrb[22].mxu1  ;;  %v2291_v48 = vcombine.high %v2265_v41, %v2273_v42  ;;  %v2307_v49 = vcombine.high %v2281_v43, %v2289_v44  ;;  %v2290_v50 = vcombine.low %v2265_v41, %v2273_v42  ;;  %v2306_v51 = vcombine.low %v2281_v43, %v2289_v44 }
 0x6ae   : > { %v3087_v17 = vsel %vm6344_vm2, %v3005_v46, -inf  ;;  %v5082_v53 = vpop.f32.mrb[7].mxu0  ;;  %v5087_v54 = vpop.f32.mrb[23].mxu1  ;;  %v3088_v7 = vsel %vm6344_vm2, %v3081_v47, -inf }
 0x6af   : > { %v3095_v60 = vsel %vm1853_vm3, %v3087_v17, -inf  ;;  %v6529_v13 = vrot.slane %v2291_v48, %v6288_v30  ;;  %v6532_v3 = vrot.slane %v2307_v49, %v6288_v30  ;;  %v6537_v11 = vrot.slane %v2290_v50, %v6288_v30 }
 0x6b0   : > { %3096 = vmax.xlane.f32.xlu0 %v3095_v60  ;;  %v6540_v58 = vrot.slane %v2306_v51, %v6288_v30  ;;  %v3098_v12 = vsel %vm1853_vm3, %v3088_v7, -inf }
 0x6b1   : > { %v2325_v1 = vcombine.high %v6529_v13, %v6532_v3  ;;  %v2324_v63 = vcombine.low %v6529_v13, %v6532_v3 }
 0x6b2   : > { %v2322_v55 = vcombine.low %v6537_v11, %v6540_v58  ;;  %v2323_v4 = vcombine.high %v6537_v11, %v6540_v58 }
 0x6b4   : > { %3093 = vmax.xlane.f32.xlu0 %v3092_v5 }
 0x6b8   : > { %3099 = vmax.xlane.f32.xlu0 %v3098_v12 }
 0x73a   : > { %v3091_v14 = vpop.xlane.xlu1 %3090 }
 0x73b   : > { %v3101_v15 = vsub.f32 %v3085_v37, %v3091_v14 }
 0x73d   : > { %v3105_v16 = vmul.f32 1.442695, %v3101_v15  ;;  %v3097_v0 = vpop.xlane.xlu0 %3096 }
 0x73e   : > { %v3103_v2 = vsub.f32 %v3087_v17, %v3097_v0 }
 0x73f   : > { %5387 = vpow2.f32 %v3105_v16 }
 0x740   : > { %v3109_v18 = vmul.f32 1.442695, %v3103_v2 }
 0x741   : > { %v3094_v19 = vpop.xlane.xlu0 %3093 }
 0x742   : > { %5389 = vpow2.f32 %v3109_v18  ;;  %v3102_v20 = vsub.f32 %v3086_v8, %v3094_v19 }
 0x744   : > { %v3107_v21 = vmul.f32 1.442695, %v3102_v20 }
 0x745   : > { %v3100_v22 = vpop.xlane.xlu0 %3099 }
 0x746   : > { %5391 = vpow2.f32 %v3107_v21  ;;  %v3104_v28 = vsub.f32 %v3088_v7, %v3100_v22 }
 0x748   : > { %v3111_v52 = vmul.f32 1.442695, %v3104_v28 }
 0x749   : > { %v6554_v24 = vpop.eup %5387 }
 0x74a   : > { %5393 = vpow2.f32 %v3111_v52  ;;  %v3113_v25 = vsel %vm1853_vm3, %v6554_v24, 0.0 }
 0x74b   : > { %3114 = vadd.xlane.f32.xlu1 %v3113_v25 }
 0x74c   : > { %v6558_v26 = vpop.eup %5389 }
 0x74d   : > { %v3119_v27 = vsel %vm1853_vm3, %v6558_v26, 0.0 }
 0x74f   : > { %3120 = vadd.xlane.f32.xlu1 %v3119_v27 }
 0x750   : > { %v5392_v40 = vpop.eup %5391 }
 0x751   : > { %v3116_v9 = vsel %vm1853_vm3, %v5392_v40, 0.0 }
 0x752   : > { %3117 = vadd.xlane.f32.xlu0 %v3116_v9 }
 0x754   : > { %v6563_v29 = vpop.eup %5393 }
 0x755   : > { %v3122_v31 = vsel %vm1853_vm3, %v6563_v29, 0.0 }
 0x756   : > { %3123 = vadd.xlane.f32.xlu0 %v3122_v31 }
 0x760   : > { %2636 = vrot.lane.b32.xlu1 %v6274_v10, %s5733_s24 }
 0x764   : > { %2642 = vrot.lane.b32.xlu1 %v6274_v10, %s5735_s1 }
 0x76c   : > { %2639 = vrot.lane.b32.xlu0 %v6274_v10, %s5734_s28 }
 0x7d8   : > { %v3115_v33 = vpop.xlane.xlu1 %3114 }
 0x7d9   : > { %5395 = vrcp.f32 %v3115_v33 }
 0x7dc   : > { %v3121_v34 = vpop.xlane.xlu1 %3120 }
 0x7df   : > { %v3118_v35 = vpop.xlane.xlu0 %3117 }
 0x7e0   : > { %v2637_v36 = vpop.permute.xlu1 %2636  ;;  %5397 = vrcp.f32 %v3118_v35 }
 0x7e1   : > { %5399 = vrcp.f32 %v3121_v34 }
 0x7e3   : > { %v3124_v62 = vpop.xlane.xlu0 %3123  ;;  %v5396_v0 = vpop.eup %5395 }
 0x7e4   : > { %v2643_v37 = vpop.permute.xlu1 %2642  ;;  %5401 = vrcp.f32 %v3124_v62  ;;  %v3129_v34 = vmul.f32 %v5396_v0, %v6554_v24 }
 0x7e5   : > { %v2661_v38 = vcombine.low %v2637_v36, %v2643_v37  ;;  %v2662_v39 = vcombine.high %v2637_v36, %v2643_v37 }
 0x7e7   : > { %v2640_v41 = vpop.permute.xlu0 %2639  ;;  %v2669_v44 = vrot.slane %v2661_v38, %v6285_v23  ;;  %v2676_v45 = vrot.slane %v2662_v39, %v6285_v23  ;;  %v5282_v38 = vld [vmem:[%s6155_s16 + $0x18] sm:$0xff]   ;;  %v5283_v39 = vld [vmem:[%s6155_s16 + $0x20] sm:$0xff]  }
 0x7e8   : > { %v2645_v42 = vcombine.low %v6274_v10, %v2640_v41  ;;  %v2646_v43 = vcombine.high %v6274_v10, %v2640_v41  ;;  %v5284_v41 = vld [vmem:[%s6155_s16 + $0x28] sm:$0xff]  }
 0x7ea   : > { %v2653_v46 = vrot.slane %v2645_v42, %v6285_v23  ;;  %v2660_v47 = vrot.slane %v2646_v43, %v6285_v23  ;;  %v5398_v21 = vpop.eup %5397 }
 0x7eb   : > { %v5400_v52 = vpop.eup %5399  ;;  %v3130_v35 = vmul.f32 %v5398_v21, %v5392_v40  ;;  %v5280_v40 = vld [vmem:[%s6155_s16 + $0x8] sm:$0xff]  }
 0x7ec   : > { %v2677_v48 = vcombine.low %v2653_v46, %v2669_v44  ;;  %v2678_v49 = vcombine.high %v2653_v46, %v2669_v44  ;;  %v2693_v50 = vcombine.low %v2660_v47, %v2676_v45  ;;  %v2694_v51 = vcombine.high %v2660_v47, %v2676_v45 }
 0x7ed   : > { %v3131_v37 = vmul.f32 %v5400_v52, %v6558_v26  ;;  %v5279_v26 = vld [vmem:[%s6155_s16] sm:$0xff]  }
 0x7ee   : > { %v2685_v17 = vrot.slane %v2677_v48, %v6288_v30  ;;  %v2692_v53 = vrot.slane %v2678_v49, %v6288_v30  ;;  %v2701_v10 = vrot.slane %v2693_v50, %v6288_v30  ;;  %v2708_v54 = vrot.slane %v2694_v51, %v6288_v30  ;;  %v5402_v33 = vpop.eup %5401 }
 0x7ef   : > { %v3132_v24 = vmul.f32 %v5402_v33, %v6563_v29  ;;  %v5281_v29 = vld [vmem:[%s6155_s16 + $0x10] sm:$0xff]  }
 0x7f0   : > { %v2713_v60 = vcombine.low %v2685_v17, %v2692_v53  ;;  %v4811_v8 = vcombine.high %v2685_v17, %v2692_v53  ;;  %v2729_v5 = vcombine.low %v2701_v10, %v2708_v54  ;;  %v4812_v7 = vcombine.high %v2701_v10, %v2708_v54 }
 0x7f2   : > { %v2720_v12 = vrot.slane %v2713_v60, %v6285_v23  ;;  %v2728_v14 = vrot.slane %v4811_v8, %v6285_v23  ;;  %v2736_v15 = vrot.slane %v2729_v5, %v6285_v23  ;;  %v2744_v16 = vrot.slane %v4812_v7, %v6285_v23 }
 0x7f4   : > { %v2745_v2 = vcombine.low %v2720_v12, %v2728_v14  ;;  %v2761_v18 = vcombine.low %v2736_v15, %v2744_v16  ;;  %v2746_v19 = vcombine.high %v2720_v12, %v2728_v14  ;;  %v2762_v20 = vcombine.high %v2736_v15, %v2744_v16 }
 0x7f6   : > { %v2753_v22 = vrot.slane %v2745_v2, %v6288_v30  ;;  %v2769_v28 = vrot.slane %v2761_v18, %v6288_v30  ;;  %v2760_v25 = vrot.slane %v2746_v19, %v6288_v30  ;;  %v2776_v27 = vrot.slane %v2762_v20, %v6288_v30 }
 0x7f8   : > { %v2777_v9 = vcombine.low %v2753_v22, %v2769_v28  ;;  %v2778_v31 = vcombine.high %v2753_v22, %v2769_v28  ;;  %v2779_v36 = vcombine.low %v2760_v25, %v2776_v27  ;;  %v2780_v62 = vcombine.high %v2760_v25, %v2776_v27  ;;  %v5285_v22 = vld [vmem:[%s6155_s16 + $0x30] sm:$0xff]  }
 0x7fa   : > { %5089 = vmatpush3.msra.mxu0 %v2777_v9  ;;  %5094 = vmatpush3.msra.mxu1 %v2778_v31 }
 0x7fb   : > { %5091 = vmatmul.mubr.msk.f32.vlgmr.msra.gmra.mrb[8].mxu0 %vm1853_vm3, %v3129_v34  ;;  %5096 = vmatmul.mubr.msk.f32.vlgmr.msra.gmra.mrb[24].mxu1 %vm1853_vm3, %v3130_v35  ;;  %v5286_v35 = vld [vmem:[%s6155_s16 + $0x38] sm:$0xff]   ;;  %s6933_s16 = scalar_lea.vmem %s6862_s6, %s6165_s21 }
 0x7fc   : > { %5098 = vmatprep.subr.mxu0 %v5730_v6  ;;  %5103 = vmatprep.subr.mxu1 %v5730_v6  ;;  %v4827_v11 = vld [vmem:[%s6933_s16] ss:$0 sm:$0xff] }
 0x7fd   : > { %5099 = vmatpush3.msra.mxu0 %v2779_v36  ;;  %5104 = vmatpush3.msra.mxu1 %v2780_v62 }
 0x7fe   : > { %5100 = vmatprep.mubr.msk.f32.mxu0 %vm5732_vm0, %v5730_v6  ;;  %5105 = vmatprep.mubr.msk.f32.mxu1 %vm5732_vm0, %v5730_v6 }
 0x7ff   : > { %5101 = vmatmul.mubr.msk.f32.vlgmr.msra.gmra.mrb[10].mxu0 %vm1853_vm3, %v3131_v37  ;;  %5106 = vmatmul.mubr.msk.f32.vlgmr.msra.gmra.mrb[26].mxu1 %vm1853_vm3, %v3132_v24 }
 0x800   : > { %5108 = vmatprep.subr.bf16.mxu0 %v5730_v6  ;;  %5124 = vmatprep.mubr.msk.bf16.mxu0 %vm5732_vm0, %v5730_v6 }
 0x801   : > { %3978 = vmatprep.mubr.bf16.mxu1 %v5731_v32  ;;  %5109 = vmatpush3.bf16.msra.mxu0 %v5279_v26 }
 0x802   : > { %5110 = vmatprep.subr.bf16.mxu0 %v5730_v6 }
 0x805   : > { %5111 = vmatpush3.bf16.msra.mxu0 %v5280_v40 }
 0x806   : > { %5112 = vmatprep.subr.bf16.mxu0 %v5730_v6 }
 0x809   : > { %5113 = vmatpush3.bf16.msra.mxu0 %v5281_v29 }
 0x80a   : > { %5114 = vmatprep.subr.bf16.mxu0 %v5730_v6 }
 0x80d   : > { %5115 = vmatpush3.bf16.msra.mxu0 %v5282_v38 }
 0x80e   : > { %5116 = vmatprep.subr.bf16.mxu0 %v5730_v6 }
 0x811   : > { %5117 = vmatpush3.bf16.msra.mxu0 %v5283_v39 }
 0x812   : > { %5118 = vmatprep.subr.bf16.mxu0 %v5730_v6 }
 0x815   : > { %5119 = vmatpush3.bf16.msra.mxu0 %v5284_v41 }
 0x816   : > { %5120 = vmatprep.subr.bf16.mxu0 %v5730_v6 }
 0x819   : > { %5121 = vmatpush3.bf16.msra.mxu0 %v5285_v22 }
 0x81a   : > { %5122 = vmatprep.subr.bf16.mxu0 %v5730_v6 }
 0x81d   : > { %5123 = vmatpush3.bf16.msra.mxu0 %v5286_v35  ;;  %v5310_v35 = vld [vmem:[%s6157_s23 + $0x6c] ss:$16 sps:$4 sm:$0xff]  }
 0x8ce   : > { %v3202_v42 = vpop.f32.mrb[8].mxu0  ;;  %v3275_v43 = vpop.f32.mrb[24].mxu1 }
 0x8cf   : > { %v5092_v44 = vpop.f32.mrb[9].mxu0  ;;  %v5097_v45 = vpop.f32.mrb[25].mxu1 }
 0x8d2   : > { %v3348_v46 = vpop.f32.mrb[10].mxu0  ;;  %v3421_v47 = vpop.f32.mrb[26].mxu1 }
 0x8d3   : > { %v3425_v48 = vcombine.low %v3202_v42, %v3348_v46  ;;  %v3426_v49 = vcombine.high %v3202_v42, %v3348_v46  ;;  %v3441_v50 = vcombine.low %v3275_v43, %v3421_v47  ;;  %v3442_v51 = vcombine.high %v3275_v43, %v3421_v47  ;;  %v5102_v17 = vpop.f32.mrb[11].mxu0  ;;  %v5107_v53 = vpop.f32.mrb[27].mxu1 }
 0x8d4   : > { %v5423_v53 = vld [vmem:[#allocation14] sm:$0xff] }
 0x8d5   : > { %v3433_v10 = vrot.slane %v3425_v48, %v6285_v23  ;;  %v3440_v54 = vrot.slane %v3426_v49, %v6285_v23  ;;  %v3449_v60 = vrot.slane %v3441_v50, %v6285_v23  ;;  %v3456_v8 = vrot.slane %v3442_v51, %v6285_v23 }
 0x8d7   : > { %v3457_v5 = vcombine.low %v3433_v10, %v3449_v60  ;;  %v3458_v7 = vcombine.high %v3433_v10, %v3449_v60  ;;  %v3473_v12 = vcombine.low %v3440_v54, %v3456_v8  ;;  %v3474_v14 = vcombine.high %v3440_v54, %v3456_v8 }
 0x8d9   : > { %v3465_v15 = vrot.slane %v3457_v5, %v6288_v30  ;;  %v3472_v16 = vrot.slane %v3458_v7, %v6288_v30  ;;  %v3481_v0 = vrot.slane %v3473_v12, %v6288_v30  ;;  %v3488_v2 = vrot.slane %v3474_v14, %v6288_v30  ;;  %v5287_v5 = vld [vmem:[%s6157_s23] ss:$16 sps:$4 sm:$0xff]   ;;  %v5289_v7 = vld [vmem:[%s6157_s23 + $0x4] ss:$16 sps:$4 sm:$0xff]   ;;  %v5290_v12 = vld [vmem:[%s6157_s23 + $0x8] ss:$16 sps:$4 sm:$0xff]  }
 0x8da   : > { %v5292_v14 = vld [vmem:[%s6157_s23 + $0xc] ss:$16 sps:$4 sm:$0xff]   ;;  %3946 = vmatprep.subr.bf16.mxu1 %v5289_v7  ;;  %v5337_v7 = vld [vmem:[%s6195_s9] sm:$0xff]  }
 0x8db   : > { %v3493_v18 = vcombine.low %v3465_v15, %v3472_v16  ;;  %v4825_v19 = vcombine.high %v3465_v15, %v3472_v16  ;;  %v3509_v20 = vcombine.low %v3481_v0, %v3488_v2  ;;  %v4826_v21 = vcombine.high %v3481_v0, %v3488_v2  ;;  %v5295_v15 = vld [vmem:[%s6157_s23 + $0x24] ss:$16 sps:$4 sm:$0xff]   ;;  %v5298_v16 = vld [vmem:[%s6157_s23 + $0x2c] ss:$16 sps:$4 sm:$0xff]   ;;  %3989 = vmatprep.subr.bf16.mxu0 %v5292_v14  ;;  %v5293_v0 = vld [vmem:[%s6157_s23 + $0x20] ss:$16 sps:$4 sm:$0xff]  }
 0x8dc   : > { %3947 = vmatpush1.bf16.msra.mxu1 %v5287_v5  ;;  %v5296_v2 = vld [vmem:[%s6157_s23 + $0x28] ss:$16 sps:$4 sm:$0xff]   ;;  %v5336_v5 = vld [vmem:[%s6195_s9 + $0xc0] sm:$0xff]  }
 0x8dd   : > { %v3500_v28 = vrot.slane %v3493_v18, %v6285_v23  ;;  %v3508_v52 = vrot.slane %v4825_v19, %v6285_v23  ;;  %v3516_v25 = vrot.slane %v3509_v20, %v6285_v23  ;;  %v3524_v27 = vrot.slane %v4826_v21, %v6285_v23  ;;  %3948 = vmatprep.subr.bf16.mxu1 %v5295_v15  ;;  %v5339_v14 = vld [vmem:[%s6195_s9 + $0x48] sm:$0xff]  }
 0x8de   : > { %v5340_v15 = vld [vmem:[%s6195_s9 + $0xc8] sm:$0xff]  }
 0x8df   : > { %v3526_v9 = vcombine.high %v3500_v28, %v3508_v52  ;;  %v3542_v31 = vcombine.high %v3516_v25, %v3524_v27  ;;  %v3525_v33 = vcombine.low %v3500_v28, %v3508_v52  ;;  %v3541_v34 = vcombine.low %v3516_v25, %v3524_v27  ;;  %v5301_v27 = vld [vmem:[%s6157_s23 + $0x44] ss:$16 sps:$4 sm:$0xff]  }
 0x8e0   : > { %3949 = vmatpush1.bf16.msra.mxu1 %v5293_v0  ;;  %v5342_v0 = vld [vmem:[%s6195_s9 + $0x88] sm:$0xff]  }
 0x8e1   : > { %v3540_v36 = vrot.slane %v3526_v9, %v6288_v30  ;;  %v3556_v62 = vrot.slane %v3542_v31, %v6288_v30  ;;  %v3533_v37 = vrot.slane %v3525_v33, %v6288_v30  ;;  %v3549_v24 = vrot.slane %v3541_v34, %v6288_v30  ;;  %v5304_v9 = vld [vmem:[%s6157_s23 + $0x4c] ss:$16 sps:$4 sm:$0xff]   ;;  %v5299_v31 = vld [vmem:[%s6157_s23 + $0x40] ss:$16 sps:$4 sm:$0xff]   ;;  %v5302_v33 = vld [vmem:[%s6157_s23 + $0x48] ss:$16 sps:$4 sm:$0xff]   ;;  %3950 = vmatprep.subr.bf16.mxu1 %v5301_v27 }
 0x8e2   : > { %v5307_v34 = vld [vmem:[%s6157_s23 + $0x64] ss:$16 sps:$4 sm:$0xff]  }
 0x8e3   : > { %v3560_v26 = vcombine.high %v3540_v36, %v3556_v62  ;;  %v3558_v40 = vcombine.high %v3533_v37, %v3549_v24  ;;  %v3557_v23 = vcombine.low %v3533_v37, %v3549_v24  ;;  %v3559_v29 = vcombine.low %v3540_v36, %v3556_v62  ;;  %v5305_v36 = vld [vmem:[%s6157_s23 + $0x60] ss:$16 sps:$4 sm:$0xff]   ;;  %v5308_v62 = vld [vmem:[%s6157_s23 + $0x68] ss:$16 sps:$4 sm:$0xff]   ;;  %v5313_v37 = vld [vmem:[%s6157_s23 + $0x84] ss:$16 sps:$4 sm:$0xff]  }
 0x8e4   : > { %3951 = vmatpush1.bf16.msra.mxu1 %v5299_v31  ;;  %v5316_v24 = vld [vmem:[%s6157_s23 + $0x8c] ss:$16 sps:$4 sm:$0xff]   ;;  %v5352_v27 = vld [vmem:[%s6195_s9 + $0xe0] sm:$0xff]  }
 0x8e5   : > { %v5242_v38 = vpack.i.bf16 %v3560_v26, %v2325_v1  ;;  %v5232_v6 = vpack.i.bf16 %v3558_v40, %v2323_v4  ;;  %v5237_v39 = vpack.i.bf16 %v3559_v29, %v2324_v63  ;;  %3952 = vmatprep.subr.bf16.mxu1 %v5307_v34  ;;  %v5311_v26 = vld [vmem:[%s6157_s23 + $0x80] ss:$16 sps:$4 sm:$0xff]   ;;  %v5314_v40 = vld [vmem:[%s6157_s23 + $0x88] ss:$16 sps:$4 sm:$0xff]   ;;  %v5322_v29 = vld [vmem:[%s6157_s23 + $0xac] ss:$16 sps:$4 sm:$0xff]  }
 0x8e6   : > { %v5354_v31 = vld [vmem:[%s6195_s9 + $0xa0] sm:$0xff]   ;;  %v5356_v34 = vld [vmem:[%s6195_s9 + $0xe8] sm:$0xff]  }
 0x8e7   : > { %5243 = vrot.lane.b32.xlu0 %v5242_v38, %s5733_s24  ;;  %5233 = vrot.lane.b32.xlu1 %v5232_v6, %s5735_s1  ;;  %v5317_v38 = vld [vmem:[%s6157_s23 + $0xa0] ss:$16 sps:$4 sm:$0xff]   ;;  %v5320_v6 = vld [vmem:[%s6157_s23 + $0xa8] ss:$16 sps:$4 sm:$0xff]  }
 0x8e8   : > { %3953 = vmatpush1.bf16.msra.mxu1 %v5305_v36  ;;  %v5358_v36 = vld [vmem:[%s6195_s9 + $0xa8] sm:$0xff]  }
 0x8e9   : > { %3954 = vmatprep.subr.bf16.mxu1 %v5313_v37  ;;  %v5360_v37 = vld [vmem:[%s6195_s9 + $0xf0] sm:$0xff]  }
 0x8eb   : > { %5238 = vrot.lane.b32.xlu1 %v5237_v39, %s5734_s28  ;;  %v5325_v39 = vld [vmem:[%s6157_s23 + $0xc4] ss:$16 sps:$4 sm:$0xff]  }
 0x8ec   : > { %3955 = vmatpush1.bf16.msra.mxu1 %v5311_v26  ;;  %v5362_v26 = vld [vmem:[%s6195_s9 + $0xb0] sm:$0xff]  }
 0x959   : > { %v5234_v30 = vpop.permute.xlu1 %5233  ;;  %v5244_v43 = vpop.permute.xlu0 %5243 }
 0x95a   : > { %v5236_v41 = vunpack.i.h.bf16 %v5234_v30  ;;  %v5235_v42 = vunpack.i.l.bf16 %v5234_v30  ;;  %v5246_v4 = vunpack.i.h.bf16 %v5244_v43  ;;  %v5245_v46 = vunpack.i.l.bf16 %v5244_v43  ;;  %v5328_v30 = vld [vmem:[%s6157_s23 + $0xcc] ss:$16 sps:$4 sm:$0xff]   ;;  %v5331_v43 = vld [vmem:[%s6157_s23 + $0xe4] ss:$16 sps:$4 sm:$0xff]  }
 0x95c   : > { %v2338_v13 = vsel %vm1542_vm1, %v2322_v55, %v5235_v42  ;;  %v3573_v3 = vsel %vm1542_vm1, %v3557_v23, %v5236_v41  ;;  %v5319_v23 = vld [vmem:[%s6157_s23 + $0xa4] ss:$16 sps:$4 sm:$0xff]   ;;  %v5323_v41 = vld [vmem:[%s6157_s23 + $0xc0] ss:$16 sps:$4 sm:$0xff]   ;;  %v5326_v42 = vld [vmem:[%s6157_s23 + $0xc8] ss:$16 sps:$4 sm:$0xff]  }
 0x95d   : > { %v5239_v1 = vpop.permute.xlu1 %5238  ;;  %3956 = vmatprep.subr.bf16.mxu1 %v5319_v23  ;;  %v5364_v23 = vld [vmem:[%s6195_s9 + $0xf8] sm:$0xff]  }
 0x95e   : > { %v5241_v44 = vunpack.i.h.bf16 %v5239_v1  ;;  %v5240_v45 = vunpack.i.l.bf16 %v5239_v1  ;;  %3957 = vmatpush1.bf16.msra.mxu1 %v5317_v38  ;;  %v5334_v1 = vld [vmem:[%s6157_s23 + $0xec] ss:$16 sps:$4 sm:$0xff]  }
 0x95f   : > { %3958 = vmatprep.subr.bf16.mxu1 %v5325_v39  ;;  %v5366_v38 = vld [vmem:[%s6195_s9 + $0xb8] sm:$0xff]   ;;  %v3780_v39 = vsub.s32 3, %v6255_v56 }
 0x960   : > { %v2340_v63 = vsel %vm2339_vm4, %v2338_v13, %v5240_v45  ;;  %v3574_v47 = vsel %vm2339_vm4, %v3573_v3, %v5241_v44  ;;  %v5329_v44 = vld [vmem:[%s6157_s23 + $0xe0] ss:$16 sps:$4 sm:$0xff]   ;;  %v5332_v45 = vld [vmem:[%s6157_s23 + $0xe8] ss:$16 sps:$4 sm:$0xff]  }
 0x961   : > { %v2342_v48 = vsel %vm2341_vm5, %v2340_v63, %v5245_v46  ;;  %v3575_v49 = vsel %vm2341_vm5, %v3574_v47, %v5246_v4 }
 0x962   : > { %v3576_v50 = vpack.c.bf16 %v3575_v49, %v2342_v48  ;;  %3959 = vmatpush1.bf16.msra.mxu1 %v5323_v41 }
 0x963   : > { %3960 = vmatprep.subr.bf16.mxu1 %v5331_v43 }
 0x964   : > { %5125 = vmatmul.mubr.bf16.vlgmr.msra.gmra.mrb[12].mxu0 %v3576_v50  ;;  %v4836_v50 = vld [vmem:[%s774_s30] ss:$0 sm:$0xff] }
 0x965   : > { %4021 = vmatprep.mubr.bf16.mxu0 %v5731_v32  ;;  %v5424_v32 = vld [vmem:[#allocation14 + $0x8] sm:$0xff]  ;;  %3990 = vmatpush1.bf16.msra.mxu0 %v5290_v12  ;;  %v5338_v12 = vld [vmem:[%s6195_s9 + $0x80] sm:$0xff]  }
 0x966   : > { %3991 = vmatprep.subr.bf16.mxu0 %v5298_v16  ;;  %3961 = vmatpush1.bf16.msra.mxu1 %v5329_v44  ;;  %v5341_v16 = vld [vmem:[%s6195_s9 + $0x8] sm:$0xff]  }
 0x969   : > { %3992 = vmatpush1.bf16.msra.mxu0 %v5296_v2  ;;  %v5343_v2 = vld [vmem:[%s6195_s9 + $0x50] sm:$0xff]  }
 0x96a   : > { %3993 = vmatprep.subr.bf16.mxu0 %v5304_v9  ;;  %v5353_v9 = vld [vmem:[%s6195_s9 + $0x20] sm:$0xff]  }
 0x96d   : > { %3994 = vmatpush1.bf16.msra.mxu0 %v5302_v33  ;;  %v5355_v33 = vld [vmem:[%s6195_s9 + $0x68] sm:$0xff]  }
 0x96e   : > { %3995 = vmatprep.subr.bf16.mxu0 %v5310_v35  ;;  %v5357_v35 = vld [vmem:[%s6195_s9 + $0x28] sm:$0xff]  }
 0x971   : > { %3996 = vmatpush1.bf16.msra.mxu0 %v5308_v62  ;;  %v5359_v62 = vld [vmem:[%s6195_s9 + $0x70] sm:$0xff]  }
 0x972   : > { %3997 = vmatprep.subr.bf16.mxu0 %v5316_v24  ;;  %v5361_v24 = vld [vmem:[%s6195_s9 + $0x30] sm:$0xff]  }
 0x975   : > { %3998 = vmatpush1.bf16.msra.mxu0 %v5314_v40  ;;  %v5363_v40 = vld [vmem:[%s6195_s9 + $0x78] sm:$0xff]  }
 0x976   : > { %3999 = vmatprep.subr.bf16.mxu0 %v5322_v29  ;;  %v5365_v29 = vld [vmem:[%s6195_s9 + $0x38] sm:$0xff]  }
 0x979   : > { %4000 = vmatpush1.bf16.msra.mxu0 %v5320_v6  ;;  %v3764_v6 = vld [vmem:[%s6189_s5] sm:$0xf] }
 0x97a   : > { %4001 = vmatprep.subr.bf16.mxu0 %v5328_v30  ;;  %v3769_v30 = vrot.slane %v3764_v6, %v874_v57  ;;  %v3777_v41 = vrot.slane %v3764_v6, %v882_v61  ;;  %v3781_v43 = vrot.slane %v3764_v6, %v3780_v39 }
 0x97d   : > { %4002 = vmatpush1.bf16.msra.mxu0 %v5326_v42  ;;  %v3773_v42 = vrot.slane %v3764_v6, %v878_v59 }
 0x97e   : > { %4003 = vmatprep.subr.bf16.mxu0 %v5334_v1 }
 0x981   : > { %4004 = vmatpush1.bf16.msra.mxu0 %v5332_v45 }
 0x982   : > { %4986 = vmatprep.subr.bf16.mxu0 %v5336_v5 }
 0xa37   : > { %v3682_v58 = vpop.f32.mrb[12].mxu0 }
 0xa38   : > { %v3683_v55 = vadd.f32 %v4827_v11, %v3682_v58  ;;  %v5126_v51 = vpop.f32.mrb[13].mxu0 }
 0xa39   : > { %v3685_v17 = vpop.f32.mrb[14].mxu0  ;;  %v4837_v51 = vld [vmem:[%s777_s26] ss:$0 sm:$0xff] }
 0xa3a   : > { %v6662_v10 = vadd.f32 %v5423_v53, %v3683_v55  ;;  %v3686_v54 = vadd.f32 %v4827_v11, %v3685_v17  ;;  %v5127_v60 = vpop.f32.mrb[15].mxu0 }
 0xa3c   : > { %v6664_v8 = vadd.f32 %v5424_v32, %v3686_v54  ;;  %3693 = vadd.xlane.f32.xlu1 %v6662_v10  ;;  %v5335_v32 = vld [vmem:[%s6195_s9 + $0x40] sm:$0xff]  }
 0xa3d   : > { %4964 = vmatprep.subr.bf16.mxu1 %v5335_v32 }
 0xa3e   : > { %3695 = vadd.xlane.f32.xlu0 %v6664_v8 }
 0xac9   : > { %v3694_v18 = vpop.xlane.xlu1 %3693 }
 0xaca   : > { %v3697_v19 = vmul.f32 0.0078125, %v3694_v18  ;;  %v5344_v18 = vld [vmem:[%s6195_s9 + $0xd0] sm:$0xff]  }
 0xacb   : > { %v3696_v20 = vpop.xlane.xlu0 %3695 }
 0xacc   : > { %v6677_v21 = vsub.f32 %v6662_v10, %v3697_v19  ;;  %v3698_v22 = vmul.f32 0.0078125, %v3696_v20  ;;  %v5345_v19 = vld [vmem:[%s6195_s9 + $0x10] sm:$0xff]  }
 0xacd   : > { %v5346_v20 = vld [vmem:[%s6195_s9 + $0x90] sm:$0xff]  }
 0xace   : > { %v6680_v28 = vsub.f32 %v6664_v8, %v3698_v22  ;;  %v3701_v52 = vmul.f32 %v6677_v21, %v6677_v21  ;;  %v5348_v22 = vld [vmem:[%s6195_s9 + $0xd8] sm:$0xff]  }
 0xad0   : > { %3703 = vadd.xlane.f32.xlu0 %v3701_v52  ;;  %v3702_v25 = vmul.f32 %v6680_v28, %v6680_v28  ;;  %v5350_v52 = vld [vmem:[%s6195_s9 + $0x98] sm:$0xff]  }
 0xad4   : > { %3705 = vadd.xlane.f32.xlu0 %v3702_v25  ;;  %v5351_v25 = vld [vmem:[%s6195_s9 + $0x60] sm:$0xff]  }
 0xb5d   : > { %v3704_v4 = vpop.xlane.xlu0 %3703 }
 0xb5e   : > { %v3707_v46 = vmul.f32 0.0078125, %v3704_v4 }
 0xb60   : > { %v3709_v13 = vadd.f32 1e-05, %v3707_v46 }
 0xb61   : > { %v3706_v3 = vpop.xlane.xlu0 %3705 }
 0xb62   : > { %5403 = vrsqrt.f32 %v3709_v13  ;;  %v3708_v63 = vmul.f32 0.0078125, %v3706_v3 }
 0xb64   : > { %v3710_v47 = vadd.f32 1e-05, %v3708_v63 }
 0xb66   : > { %5405 = vrsqrt.f32 %v3710_v47 }
 0xb6c   : > { %v5404_v48 = vpop.eup %5403 }
 0xb6d   : > { %v3713_v49 = vmul.f32 %v5404_v48, %v6677_v21  ;;  %v5347_v21 = vld [vmem:[%s6195_s9 + $0x58] sm:$0xff]  }
 0xb6f   : > { %v3721_v55 = vmul.f32 %v4836_v50, %v3713_v49 }
 0xb70   : > { %v5406_v11 = vpop.eup %5405 }
 0xb71   : > { %v3714_v58 = vmul.f32 %v5406_v11, %v6680_v28  ;;  %v3729_v53 = vadd.f32 %v4837_v51, %v3721_v55  ;;  %v5349_v28 = vld [vmem:[%s6195_s9 + $0x18] sm:$0xff]  }
 0xb73   : > { %v3722_v17 = vmul.f32 %v4836_v50, %v3714_v58 }
 0xb75   : > { %v3730_v54 = vadd.f32 %v4837_v51, %v3722_v17 }
 0xb77   : > { %v3731_v60 = vpack.c.bf16 %v3730_v54, %v3729_v53 }
 0xb79   : > { %3979 = vmatmul.mubr.bf16.vlgmr.msra.gmra.mrb[28].mxu1 %v3731_v60  ;;  %4022 = vmatmul.mubr.bf16.vlgmr.msra.gmra.mrb[16].mxu0 %v3731_v60 }
 0xb7a   : > { %4965 = vmatpush3.bf16.msra.mxu1 %v5337_v7  ;;  %4987 = vmatpush3.bf16.msra.mxu0 %v5338_v12 }
 0xb7b   : > { %4966 = vmatprep.subr.bf16.mxu1 %v5339_v14  ;;  %4988 = vmatprep.subr.bf16.mxu0 %v5340_v15 }
 0xb7e   : > { %4967 = vmatpush3.bf16.msra.mxu1 %v5341_v16  ;;  %4989 = vmatpush3.bf16.msra.mxu0 %v5342_v0 }
 0xb7f   : > { %4968 = vmatprep.subr.bf16.mxu1 %v5343_v2  ;;  %4990 = vmatprep.subr.bf16.mxu0 %v5344_v18 }
 0xb82   : > { %4969 = vmatpush3.bf16.msra.mxu1 %v5345_v19  ;;  %4991 = vmatpush3.bf16.msra.mxu0 %v5346_v20 }
 0xb83   : > { %4970 = vmatprep.subr.bf16.mxu1 %v5347_v21  ;;  %4992 = vmatprep.subr.bf16.mxu0 %v5348_v22 }
 0xb86   : > { %4971 = vmatpush3.bf16.msra.mxu1 %v5349_v28  ;;  %4993 = vmatpush3.bf16.msra.mxu0 %v5350_v52 }
 0xb87   : > { %4972 = vmatprep.subr.bf16.mxu1 %v5351_v25  ;;  %4994 = vmatprep.subr.bf16.mxu0 %v5352_v27 }
 0xb8a   : > { %4973 = vmatpush3.bf16.msra.mxu1 %v5353_v9  ;;  %4995 = vmatpush3.bf16.msra.mxu0 %v5354_v31 }
 0xb8b   : > { %4974 = vmatprep.subr.bf16.mxu1 %v5355_v33  ;;  %4996 = vmatprep.subr.bf16.mxu0 %v5356_v34 }
 0xb8e   : > { %4975 = vmatpush3.bf16.msra.mxu1 %v5357_v35  ;;  %4997 = vmatpush3.bf16.msra.mxu0 %v5358_v36 }
 0xb8f   : > { %4976 = vmatprep.subr.bf16.mxu1 %v5359_v62  ;;  %4998 = vmatprep.subr.bf16.mxu0 %v5360_v37 }
 0xb92   : > { %4977 = vmatpush3.bf16.msra.mxu1 %v5361_v24  ;;  %4999 = vmatpush3.bf16.msra.mxu0 %v5362_v26 }
 0xb93   : > { %4978 = vmatprep.subr.bf16.mxu1 %v5363_v40  ;;  %5000 = vmatprep.subr.bf16.mxu0 %v5364_v23 }
 0xb96   : > { %4979 = vmatpush3.bf16.msra.mxu1 %v5365_v29  ;;  %5001 = vmatpush3.bf16.msra.mxu0 %v5366_v38 }
 0xc4c   : > { %v3980_v1 = vpop.f32.mrb[28].mxu1  ;;  %v4023_v44 = vpop.f32.mrb[16].mxu0 }
 0xc4d   : > { %v6762_v45 = vadd.f32 %v3980_v1, %v3769_v30  ;;  %v6764_v4 = vadd.f32 %v4023_v44, %v3777_v41  ;;  %v3982_v46 = vpop.f32.mrb[29].mxu1  ;;  %v4025_v13 = vpop.f32.mrb[17].mxu0 }
 0xc4e   : > { %v6766_v3 = vadd.f32 %v3982_v46, %v3773_v42  ;;  %v6768_v63 = vadd.f32 %v4025_v13, %v3781_v43  ;;  %v3984_v57 = vpop.f32.mrb[30].mxu1  ;;  %v4027_v47 = vpop.f32.mrb[18].mxu0 }
 0xc4f   : > { %v4040_v61 = vmul.f32 0.044715, %v6762_v45  ;;  %v4042_v56 = vmul.f32 0.044715, %v6764_v4  ;;  %v3985_v59 = vadd.f32 %v3984_v57, %v3769_v30  ;;  %v4028_v48 = vadd.f32 %v4027_v47, %v3777_v41  ;;  %v3986_v49 = vpop.f32.mrb[31].mxu1  ;;  %v4029_v50 = vpop.f32.mrb[19].mxu0 }
 0xc50   : > { %v4041_v11 = vmul.f32 0.044715, %v6766_v3  ;;  %v4043_v58 = vmul.f32 0.044715, %v6768_v63  ;;  %v6774_v55 = vadd.f32 %v3986_v49, %v3773_v42  ;;  %v6776_v51 = vadd.f32 %v4029_v50, %v3781_v43 }
 0xc51   : > { %v4048_v17 = vmul.f32 %v4040_v61, %v6762_v45  ;;  %v4050_v53 = vmul.f32 %v4042_v56, %v6764_v4  ;;  %v4044_v54 = vmul.f32 0.044715, %v3985_v59  ;;  %v4046_v60 = vmul.f32 0.044715, %v4028_v48 }
 0xc52   : > { %v4049_v32 = vmul.f32 %v4041_v11, %v6766_v3  ;;  %v4051_v5 = vmul.f32 %v4043_v58, %v6768_v63  ;;  %v4045_v7 = vmul.f32 0.044715, %v6774_v55  ;;  %v4047_v12 = vmul.f32 0.044715, %v6776_v51 }
 0xc53   : > { %v4056_v14 = vmul.f32 %v4048_v17, %v6762_v45  ;;  %v4058_v15 = vmul.f32 %v4050_v53, %v6764_v4  ;;  %v4052_v16 = vmul.f32 %v4044_v54, %v3985_v59  ;;  %v4054_v0 = vmul.f32 %v4046_v60, %v4028_v48 }
 0xc54   : > { %v4057_v2 = vmul.f32 %v4049_v32, %v6766_v3  ;;  %v4059_v18 = vmul.f32 %v4051_v5, %v6768_v63  ;;  %v4053_v19 = vmul.f32 %v4045_v7, %v6774_v55  ;;  %v4055_v20 = vmul.f32 %v4047_v12, %v6776_v51 }
 0xc55   : > { %v4064_v21 = vadd.f32 %v4056_v14, %v6762_v45  ;;  %v4066_v22 = vadd.f32 %v4058_v15, %v6764_v4  ;;  %v4060_v28 = vmul.f32 %v4052_v16, %v3985_v59  ;;  %v4062_v52 = vmul.f32 %v4054_v0, %v4028_v48 }
 0xc56   : > { %v4061_v25 = vmul.f32 %v4053_v19, %v6774_v55  ;;  %v4063_v27 = vmul.f32 %v4055_v20, %v6776_v51  ;;  %v4065_v35 = vadd.f32 %v4057_v2, %v6766_v3  ;;  %v4067_v24 = vadd.f32 %v4059_v18, %v6768_v63 }
 0xc57   : > { %v4072_v9 = vmul.f32 0.7978846, %v4064_v21  ;;  %v4074_v31 = vmul.f32 0.7978846, %v4066_v22  ;;  %v4068_v33 = vadd.f32 %v4060_v28, %v3985_v59  ;;  %v4070_v34 = vadd.f32 %v4062_v52, %v4028_v48 }
 0xc58   : > { %v4069_v36 = vadd.f32 %v4061_v25, %v6774_v55  ;;  %v4073_v26 = vmul.f32 0.7978846, %v4065_v35  ;;  %v4071_v23 = vadd.f32 %v4063_v27, %v6776_v51  ;;  %v4075_v29 = vmul.f32 0.7978846, %v4067_v24 }
 0xc59   : > { %5407 = vtanh.f32 %v4072_v9  ;;  %v4076_v62 = vmul.f32 0.7978846, %v4068_v33  ;;  %v4078_v37 = vmul.f32 0.7978846, %v4070_v34  ;;  %v4032_v1 = vmul.f32 0.5, %v6762_v45 }
 0xc5a   : > { %5409 = vtanh.f32 %v4074_v31  ;;  %v4077_v40 = vmul.f32 0.7978846, %v4069_v36  ;;  %v4079_v38 = vmul.f32 0.7978846, %v4071_v23  ;;  %v4036_v44 = vmul.f32 0.5, %v3985_v59 }
 0xc5b   : > { %5411 = vtanh.f32 %v4076_v62  ;;  %v4034_v57 = vmul.f32 0.5, %v6764_v4  ;;  %v4038_v47 = vmul.f32 0.5, %v4028_v48  ;;  %v4033_v49 = vmul.f32 0.5, %v6766_v3 }
 0xc5c   : > { %5413 = vtanh.f32 %v4078_v37  ;;  %v4037_v53 = vmul.f32 0.5, %v6774_v55  ;;  %v4035_v59 = vmul.f32 0.5, %v6768_v63  ;;  %v4039_v5 = vmul.f32 0.5, %v6776_v51  ;;  %v4870_v63 = vld [vmem:[%s784_s10] ss:$0 sm:$0xff] }
 0xc5d   : > { %5415 = vtanh.f32 %v4073_v26 }
 0xc5e   : > { %5417 = vtanh.f32 %v4077_v40 }
 0xc5f   : > { %5419 = vtanh.f32 %v4075_v29 }
 0xc60   : > { %5421 = vtanh.f32 %v4079_v38 }
 0xc63   : > { %v5408_v6 = vpop.eup %5407 }
 0xc64   : > { %v5410_v39 = vpop.eup %5409  ;;  %v4088_v30 = vadd.f32 1.0, %v5408_v6 }
 0xc65   : > { %v5412_v41 = vpop.eup %5411  ;;  %v4090_v42 = vadd.f32 1.0, %v5410_v39 }
 0xc66   : > { %v5414_v43 = vpop.eup %5413  ;;  %v4092_v46 = vadd.f32 1.0, %v5412_v41  ;;  %v4096_v11 = vmul.f32 %v4088_v30, %v4032_v1 }
 0xc67   : > { %v5416_v13 = vpop.eup %5415  ;;  %v4094_v61 = vadd.f32 1.0, %v5414_v43  ;;  %v4098_v60 = vmul.f32 %v4090_v42, %v4034_v57 }
 0xc68   : > { %v5418_v56 = vpop.eup %5417  ;;  %v4089_v50 = vadd.f32 1.0, %v5416_v13  ;;  %v4100_v58 = vmul.f32 %v4092_v46, %v4036_v44 }
 0xc69   : > { %v5420_v17 = vpop.eup %5419  ;;  %v4093_v54 = vadd.f32 1.0, %v5418_v56  ;;  %v4102_v32 = vmul.f32 %v4094_v61, %v4038_v47 }
 0xc6a   : > { %v5422_v45 = vpop.eup %5421  ;;  %v4091_v4 = vadd.f32 1.0, %v5420_v17  ;;  %v4104_v48 = vpack.c.bf16 %v4100_v58, %v4096_v11  ;;  %v4097_v7 = vmul.f32 %v4089_v50, %v4033_v49 }
 0xc6b   : > { %v4101_v12 = vmul.f32 %v4093_v54, %v4037_v53  ;;  %v4095_v3 = vadd.f32 1.0, %v5422_v45  ;;  %v4106_v14 = vpack.c.bf16 %v4102_v32, %v4098_v60 }
 0xc6c   : > { %v4099_v16 = vmul.f32 %v4091_v4, %v4035_v59 }
 0xc6d   : > { %v4105_v15 = vpack.c.bf16 %v4101_v12, %v4097_v7  ;;  %v4103_v0 = vmul.f32 %v4095_v3, %v4039_v5 }
 0xc6f   : > { %4403 = vmatprep.mubr.bf16.mxu1 %v4105_v15  ;;  %v4107_v55 = vpack.c.bf16 %v4103_v0, %v4099_v16 }
 0xc70   : > { %4404 = vmatmul.mubr.bf16.vlgmr.msra.gmra.mrb[32].mxu1 %v4104_v48 }
 0xc71   : > { %4444 = vmatprep.mubr.bf16.mxu0 %v4107_v55 }
 0xc72   : > { %4445 = vmatmul.mubr.bf16.vlgmr.msra.gmra.mrb[20].mxu0 %v4106_v14 }
 0xd43   : > { %v4980_v2 = vpop.f32.mrb[32].mxu1 }
 0xd44   : > { %v4981_v51 = vpop.f32.mrb[33].mxu1 }
 0xd45   : > { %v5002_v18 = vpop.f32.mrb[20].mxu0  ;;  %v4982_v19 = vadd.f32 %v4981_v51, %v4980_v2  ;;  %v4983_v20 = vpop.f32.mrb[34].mxu1 }
 0xd46   : > { %v5003_v21 = vpop.f32.mrb[21].mxu0  ;;  %v4984_v22 = vpop.f32.mrb[35].mxu1 }
 0xd47   : > { %v4406_v28 = vadd.f32 %v4982_v19, %v4870_v63  ;;  %v5004_v52 = vadd.f32 %v5003_v21, %v5002_v18  ;;  %v5005_v25 = vpop.f32.mrb[22].mxu0  ;;  %v4985_v27 = vadd.f32 %v4984_v22, %v4983_v20  ;;  %4458 = sbr.rel (%p4903_p8) target bundleno = 3408 (0xd50), region = 116 }
 0xd48   : > { %v5006_v9 = vpop.f32.mrb[23].mxu0 }
 0xd49   : > { %v4447_v31 = vadd.f32 %v5004_v52, %v4406_v28  ;;  %v4409_v33 = vadd.f32 %v4985_v27, %v4870_v63  ;;  %v5007_v34 = vadd.f32 %v5006_v9, %v5005_v25 }
 0xd4b   : > { %v4453_v35 = vadd.f32 %v4447_v31, %v6662_v10  ;;  %v4450_v36 = vadd.f32 %v5007_v34, %v4409_v33 }
 0xd4d   : > { %v4454_v62 = vadd.f32 %v4450_v36, %v6664_v8  ;;  %4459 = vst [vmem:[#allocation14] sm:$0xff] (!%p4903_p8), %v4453_v35 }
 0xd4f   : > { %4460 = vst [vmem:[#allocation14 + $0x8] sm:$0xff] %v4454_v62 }
 0xd50 PF: > { %p4904_p0 = scmp.ne.s32.totalorder %s5990_s17, 1 }
 0xd51   : > { %4467 = vadd.xlane.f32.xlu0 (!%p4904_p0), %v4453_v35  ;;  %s6936_s20 = sld [smem:[#allocation33_spill]] (!%p4904_p0)  ;;  %s6937_s13 = sld [smem:[#allocation34_spill]] (!%p4904_p0) }
 0xd52   : > { %4464 = sbr.rel (%p4904_p0) target bundleno = 3725 (0xe8d), region = 120 }
 0xd55   : > { %4469 = vadd.xlane.f32.xlu0 (!%p4904_p0), %v4454_v62 }
 0xd57   : > { %v4905_v1 = vld [vmem:[%s6936_s20] ss:$0 sm:$0xff] (!%p4904_p0) }
 0xd58   : > { %v4906_v46 = vld [vmem:[%s6937_s13] ss:$0 sm:$0xff] (!%p4904_p0) }
 0xdde   : > { %v4468_v37 = vpop.xlane.xlu0 %4467 }
 0xddf   : > { %v4471_v24 = vmul.f32 0.0078125, %v4468_v37 }
 0xde1   : > { %v4473_v26 = vsub.f32 %v4453_v35, %v4471_v24 }
 0xde2   : > { %v4470_v10 = vpop.xlane.xlu0 %4469 }
 0xde3   : > { %v4472_v40 = vmul.f32 0.0078125, %v4470_v10  ;;  %v4475_v23 = vmul.f32 %v4473_v26, %v4473_v26 }
 0xde5   : > { %v4474_v8 = vsub.f32 %v4454_v62, %v4472_v40  ;;  %4477 = vadd.xlane.f32.xlu1 %v4475_v23 }
 0xde7   : > { %v4476_v29 = vmul.f32 %v4474_v8, %v4474_v8 }
 0xde9   : > { %4479 = vadd.xlane.f32.xlu1 %v4476_v29 }
 0xe72   : > { %v4478_v38 = vpop.xlane.xlu1 %4477 }
 0xe73   : > { %v4481_v6 = vmul.f32 0.0078125, %v4478_v38 }
 0xe75   : > { %v4483_v39 = vadd.f32 1e-05, %v4481_v6 }
 0xe76   : > { %v4480_v30 = vpop.xlane.xlu1 %4479 }
 0xe77   : > { %5425 = vrsqrt.f32 %v4483_v39  ;;  %v4482_v41 = vmul.f32 0.0078125, %v4480_v30 }
 0xe79   : > { %v4484_v42 = vadd.f32 1e-05, %v4482_v41 }
 0xe7b   : > { %5427 = vrsqrt.f32 %v4484_v42 }
 0xe81   : > { %v5426_v43 = vpop.eup %5425 }
 0xe82   : > { %v4487_v44 = vmul.f32 %v5426_v43, %v4473_v26 }
 0xe84   : > { %v4495_v13 = vmul.f32 %v4905_v1, %v4487_v44 }
 0xe85   : > { %v5428_v57 = vpop.eup %5427 }
 0xe86   : > { %v4503_v47 = vadd.f32 %v4906_v46, %v4495_v13  ;;  %v4488_v61 = vmul.f32 %v5428_v57, %v4474_v8 }
 0xe88   : > { %4505 = vst [vmem:[#allocation14] sm:$0xff] %v4503_v47  ;;  %v4496_v56 = vmul.f32 %v4905_v1, %v4488_v61 }
 0xe8a   : > { %v4504_v49 = vadd.f32 %v4906_v46, %v4496_v56 }
 0xe8c   : > { %4506 = vst [vmem:[#allocation14 + $0x8] sm:$0xff] %v4504_v49 }
 0xe8d PF: > { %s5738_s14 = smov [#allocation14]  }
 0xe8e   : > { %s4513_s3 = sshll.u32 %s5738_s14, 4  ;;  %s4514_s3 = int_to_ptr.vmem [resolvable:$true] %s4513_s3 }
 0xe8f   : > { %s5637_s10 = scalar_lea.vmem %s4514_s3, 256  ;;  %p5644_p13 = scmp.lt.s32.totalorder %s4514_s3, %s4514_s3 }
 0xe90   : > { %p5638_p6 = scmp.ne.s32.totalorder %s4514_s3, %s5637_s10  ;;  %p5645_p11 = scmp.lt.s32.totalorder %s5637_s10, %s5637_s10 }
 0xe92   : > { %p5639_p3 = pnand %p5638_p6, %p4903_p8  ;;  %p5646_p1 = por %p5645_p11, %p5644_p13 }
 0xe94   : > { %p5640_p4 = pneg %p5639_p3 }
 0xe96   : > { %p5647_p2 = pnand %p5646_p1, %p5640_p4 }
 0xe98   : > { %5650 = shalt.err (!%p5647_p2)
}
 0xe99   : > { %s6938_s2 = sld [smem:[#allocation35_spill]] }
 0xe9f   : > { %s5651_s24 = scalar_lea.hbm %s6938_s2, 256 }
 0xea0   : > { %p5652_p10 = scmp.ne.s32.totalorder %s6938_s2, %s5651_s24  ;;  %p5657_p5 = scmp.lt.u32.totalorder %s5651_s24, %s6938_s2 }
 0xea2   : > { %p5653_p9 = pnand %p5652_p10, %p4903_p8 }
 0xea4   : > { %p5654_p12 = pneg %p5653_p9 }
 0xea6   : > { %p5659_p7 = pnand %p5657_p5, %p5654_p12 }
 0xea8   : > { %5662 = shalt.err (!%p5659_p7)
}
 0xea9   : > { %s5739_s16 = smov 128   ;;  %s5740_s23 = smov 8  }
 0xeaa   : > { %5149 = dma.vmem_to_hbm [thread:$0]  (%p4903_p8), %s4514_s3, 256, %s6938_s2, [#allocation4], %s5739_s16, %s5739_s16, %s5740_s23  }
 0xeab   : > { %5696 = dma.done.wait (%p4903_p8), [#allocation4], 256  }
 0xeac   : > { %5698 = vsyncadd (%p4903_p8), [#allocation4], 4294967040 }
 0xead PF: > { %s6939_s21 = sld [smem:[#allocation21_spill]]  ;;  %s6940_s27 = sld [smem:[#allocation20_spill]] }
 0xeae   : > { %s6941_s20 = sld [smem:[#allocation22_spill]]  ;;  %s6942_s18 = smov %s5705_s19 }
 0xeb3   : > { %p33_p0 = scmp.ge.s32.totalorder %s6939_s21, 4   ;;  %s6943_s19 = smov %s6940_s27 }
 0xeb5   :  { %35 = sbr.rel (!%p33_p0) target bundleno = 23 (0x17), region = 211 }
 0xebc   :  { %4529 = vsyncpa [#allocation3], 1 }
 0xebd   :  { %4531 = vsyncpa [#allocation3 + $0x1], 1 }
 0xebe   :  { %4532 = vsyncpa [#allocation6], 1 }
 0xebf   :  { %4534 = vsyncpa [#allocation6 + $0x1], 1 }
 0xec0   :  { %4535 = vsyncpa [#allocation9], 1 }
 0xec1   :  { %4537 = vsyncpa [#allocation9 + $0x1], 1 }
 0xec2   :  { %4538 = vsyncpa [#allocation12], 1 }
 0xec3   :  { %4540 = vsyncpa [#allocation12 + $0x1], 1 }
 0xec4   :  { %4541 = vsyncpa [#allocation4], 1 }
 0xec5   :  { %4543 = vsyncpa [#allocation4 + $0x1], 1 }

</bundles_post_ra>
